<compile_context>
chip_gen: v6e
topology: v6e:2x2x1
jax: 0.10.0
libtpu: 0.0.40
codegen_flags: <defaults>
</compile_context>

<pallas_src>
import functools

import jax
import jax.numpy as jnp
from jax import lax
from jax.experimental import pallas as pl
from jax.experimental.pallas import tpu as pltpu

EPS = 1e-5
PAD = 128  # halo width (lanes) on the flattened pixel axis; keeps interior stores 128-aligned


def _basic_block_kernel(x_ref, w1_ref, w2_ref, mask_ref, g1_ref, b1_ref,
                        g2_ref, b2_ref, out_ref, pad_ref, stk_ref, *, W):
    # x_ref    : (C, L) f32,  L = N*H*W   (channels on sublanes, pixels on lanes)
    # w*_ref   : (C, 9*C) bf16, tap-major stacked conv weights
    # mask_ref : (9, L) bf16 {0,1} per-tap validity masks ("SAME" zero padding)
    # g*/b*    : (C, 1) f32 BN affine params
    # out_ref  : (C, L) f32
    # pad_ref  : (C, L + 2*PAD) bf16 halo scratch (shared by conv1 and conv2)
    # stk_ref  : (9*C, L) bf16 stacked-K staging scratch (shared by both convs)
    C, L = x_ref.shape
    taps = [(dy, dx) for dy in range(3) for dx in range(3)]

    def conv3x3(w_ref):
        # Stage 9 shifted, input-masked bf16 taps into the sublane-stacked
        # scratch, then run ONE MXU matmul with contraction dim K = 9*C.
        for t, (dy, dx) in enumerate(taps):
            off = (dy - 1) * W + (dx - 1)
            xs = pad_ref[:, PAD + off:PAD + off + L]          # (C, L) bf16, shifted
            if (dy, dx) != (1, 1):                            # centre tap always valid
                xs = xs * mask_ref[t:t + 1, :]                # mask bf16 inputs
            stk_ref[t * C:(t + 1) * C, :] = xs                # 16-sublane-aligned store
        return jnp.dot(w_ref[...], stk_ref[...],
                       preferred_element_type=jnp.float32)    # (C, L) f32

    def bn(y, g, b):
        # training-mode BatchNorm, centred (two-pass) moments, biased variance
        inv_l = 1.0 / float(L)
        mean = jnp.sum(y, axis=1, keepdims=True) * inv_l
        d = y - mean
        var = jnp.sum(d * d, axis=1, keepdims=True) * inv_l
        return d * (g * lax.rsqrt(var + EPS)) + b

    # ---- zero the halo strips once (they are never overwritten) ---------------
    halo = jnp.zeros((C, PAD), jnp.bfloat16)
    pad_ref[:, :PAD] = halo
    pad_ref[:, PAD + L:PAD + L + PAD] = halo

    # ---- conv1 -> bn1 -> relu --------------------------------------------------
    pad_ref[:, PAD:PAD + L] = x_ref[...].astype(jnp.bfloat16)   # 128-aligned interior
    h1 = jnp.maximum(bn(conv3x3(w1_ref), g1_ref[...], b1_ref[...]), 0.0)

    # ---- conv2 -> bn2 -> +identity -> relu (single fused lane-dense store) ----
    pad_ref[:, PAD:PAD + L] = h1.astype(jnp.bfloat16)            # reuse halo scratch
    y2 = bn(conv3x3(w2_ref), g2_ref[...], b2_ref[...])
    out_ref[...] = jnp.maximum(y2 + x_ref[...], 0.0).astype(out_ref.dtype)


def _stack_weights(w_hwio):
    """(3, 3, C_in, C_out) HWIO -> (C_out, 9*C_in), tap-major, bf16."""
    kh, kw, cin, cout = w_hwio.shape
    w = w_hwio.reshape(9, cin, cout)                   # tap index = dy*3 + dx
    return jnp.transpose(w, (2, 0, 1)).reshape(cout, 9 * cin).astype(jnp.bfloat16)


def _tap_masks(N, H, W):
    """(9, N*H*W) bf16 {0,1} validity masks for the 9 taps ("SAME" zero padding)."""
    p = jnp.arange(N * H * W, dtype=jnp.int32)
    hh = (p // W) % H
    ww = p % W
    rows = []
    for dy in range(3):
        for dx in range(3):
            oy, ox = dy - 1, dx - 1
            valid = ((hh + oy >= 0) & (hh + oy < H) &
                     (ww + ox >= 0) & (ww + ox < W))
            rows.append(valid)
    return jnp.stack(rows).astype(jnp.bfloat16)


def basic_block(x_nchw, w1_hwio, w2_hwio, g1, b1, g2, b2):
    """BasicBlock forward.  x_nchw: (N, C, H, W) f32; conv weights in HWIO."""
    N, Cin, H, W = x_nchw.shape
    C = w1_hwio.shape[-1]
    assert Cin == C, "identity path requires inplanes == planes (no downsample)"
    L = N * H * W

    # layout glue (once per call here; once per network in real use -- see TODO)
    x2d = jnp.transpose(x_nchw, (1, 0, 2, 3)).reshape(Cin, L).astype(jnp.float32)
    w1s = _stack_weights(w1_hwio)
    w2s = _stack_weights(w2_hwio)
    masks = _tap_masks(N, H, W)
    g1c = g1.reshape(C, 1).astype(jnp.float32)
    b1c = b1.reshape(C, 1).astype(jnp.float32)
    g2c = g2.reshape(C, 1).astype(jnp.float32)
    b2c = b2.reshape(C, 1).astype(jnp.float32)

    full = lambda shape: pl.BlockSpec(shape, lambda i: (0,) * len(shape))

    out2d = pl.pallas_call(
        functools.partial(_basic_block_kernel, W=W),
        out_shape=jax.ShapeDtypeStruct((C, L), jnp.float32),
        grid=(1,),
        in_specs=[
            full(x2d.shape),
            full(w1s.shape),
            full(w2s.shape),
            full(masks.shape),
            full(g1c.shape),
            full(b1c.shape),
            full(g2c.shape),
            full(b2c.shape),
        ],
        out_specs=full((C, L)),
        scratch_shapes=[
            pltpu.VMEM((C, L + 2 * PAD), jnp.bfloat16),   # shared halo scratch
            pltpu.VMEM((9 * C, L), jnp.bfloat16),         # stacked-K staging scratch
        ],
        compiler_params=pltpu.CompilerParams(
            dimension_semantics=("arbitrary",),
            vmem_limit_bytes=32 * 1024 * 1024,            # actual usage ~0.3 MiB
        ),
    )(x2d, w1s, w2s, masks, g1c, b1c, g2c, b2c)

    return jnp.transpose(out2d.reshape(C, N, H, W), (1, 0, 2, 3))  # back to NCHW


def basic_block_reference(x_nchw, w1_hwio, w2_hwio, g1, b1, g2, b2):
    """Pure-JAX reference (f32 lax conv + training-mode BN)."""
    x = jnp.transpose(x_nchw, (0, 2, 3, 1)).astype(jnp.float32)

    def conv(h, w):
        return lax.conv_general_dilated(
            h, w, window_strides=(1, 1), padding="SAME",
            dimension_numbers=("NHWC", "HWIO", "NHWC"))

    def bn(y, g, b):
        m = jnp.mean(y, axis=(0, 1, 2), keepdims=True)
        v = jnp.mean((y - m) ** 2, axis=(0, 1, 2), keepdims=True)
        return (y - m) * lax.rsqrt(v + EPS) * g + b

    h1 = jnp.maximum(bn(conv(x, w1_hwio), g1, b1), 0.0)
    out = jnp.maximum(bn(conv(h1, w2_hwio), g2, b2) + x, 0.0)
    return jnp.transpose(out, (0, 3, 1, 2))


if __name__ == "__main__":
    # BasicBlock(inplanes=16, planes=16, stride=1, downsample=None)
    N, C, H, W = 2, 16, 16, 16
    key = jax.random.PRNGKey(0)
    kx, k1, k2, kg1, kb1, kg2, kb2 = jax.random.split(key, 7)

    x = jax.random.normal(kx, (N, C, H, W), dtype=jnp.float32)
    # conv weights in HWIO: (kh, kw, in, out); bias=False in conv3x3
    w1 = jax.random.normal(k1, (3, 3, C, C), dtype=jnp.float32) * 0.1
    w2 = jax.random.normal(k2, (3, 3, C, C), dtype=jnp.float32) * 0.1
    gamma1 = 1.0 + 0.1 * jax.random.normal(kg1, (C,), dtype=jnp.float32)
    beta1 = 0.1 * jax.random.normal(kb1, (C,), dtype=jnp.float32)
    gamma2 = 1.0 + 0.1 * jax.random.normal(kg2, (C,), dtype=jnp.float32)
    beta2 = 0.1 * jax.random.normal(kb2, (C,), dtype=jnp.float32)

    out = basic_block(x, w1, w2, gamma1, beta1, gamma2, beta2)
    out = jax.block_until_ready(out)

    ref = basic_block_reference(x, w1, w2, gamma1, beta1, gamma2, beta2)
    assert out.shape == (N, C, H, W)
    max_err = float(jnp.max(jnp.abs(out - ref)))
    # bf16 MXU operands -> looser tolerance than an all-f32 version
    assert jnp.allclose(out, ref, atol=5e-2, rtol=5e-2), max_err

    print("KERNEL_OK")
</pallas_src>

<mosaic_0001>
module attributes {stable_mosaic.version = 11 : i64} {
  func.func @_basic_block_kernel(%arg0: i32, %arg1: memref<16x512xf32, #tpu.memory_space<vmem>>, %arg2: memref<16x144xbf16, #tpu.memory_space<vmem>>, %arg3: memref<16x144xbf16, #tpu.memory_space<vmem>>, %arg4: memref<9x512xbf16, #tpu.memory_space<vmem>>, %arg5: memref<16x1xf32, #tpu.memory_space<vmem>>, %arg6: memref<16x1xf32, #tpu.memory_space<vmem>>, %arg7: memref<16x1xf32, #tpu.memory_space<vmem>>, %arg8: memref<16x1xf32, #tpu.memory_space<vmem>>, %arg9: memref<16x512xf32, #tpu.memory_space<vmem>>, %arg10: memref<16x768xbf16, #tpu.memory_space<vmem>>, %arg11: memref<144x512xbf16, #tpu.memory_space<vmem>>) attributes {dimension_semantics = [#tpu.dimension_semantics<arbitrary>], iteration_bounds = array<i64: 1>, scalar_prefetch = 0 : i64, scratch_operands = 2 : i64, tpu.core_type = #tpu.core_type<tc>, window_params = [{pipeline_mode = #tpu.pipeline_mode<synchronous>, transform_indices = @transform_0, window_bounds = array<i64: 16, 512>}, {pipeline_mode = #tpu.pipeline_mode<synchronous>, transform_indices = @transform_1, window_bounds = array<i64: 16, 144>}, {pipeline_mode = #tpu.pipeline_mode<synchronous>, transform_indices = @transform_2, window_bounds = array<i64: 16, 144>}, {pipeline_mode = #tpu.pipeline_mode<synchronous>, transform_indices = @transform_3, window_bounds = array<i64: 9, 512>}, {pipeline_mode = #tpu.pipeline_mode<synchronous>, transform_indices = @transform_4, window_bounds = array<i64: 16, 1>}, {pipeline_mode = #tpu.pipeline_mode<synchronous>, transform_indices = @transform_5, window_bounds = array<i64: 16, 1>}, {pipeline_mode = #tpu.pipeline_mode<synchronous>, transform_indices = @transform_6, window_bounds = array<i64: 16, 1>}, {pipeline_mode = #tpu.pipeline_mode<synchronous>, transform_indices = @transform_7, window_bounds = array<i64: 16, 1>}, {pipeline_mode = #tpu.pipeline_mode<synchronous>, transform_indices = @transform_8, window_bounds = array<i64: 16, 512>}]} {
    %cst = arith.constant 0.000000e+00 : bf16
    %0 = vector.broadcast %cst : bf16 to vector<16x128xbf16>
    %c0 = arith.constant 0 : index
    %c0_0 = arith.constant 0 : index
    %1 = vector.load %arg10[%c0, %c0_0] : memref<16x768xbf16, #tpu.memory_space<vmem>>, vector<16x128xbf16>
    tpu.vector_store %arg10[%c0, %c0_0], %0 {strides = array<i32>} : memref<16x768xbf16, #tpu.memory_space<vmem>>, vector<16x128xbf16>,
    %c0_1 = arith.constant 0 : index
    %c640 = arith.constant 640 : index
    %2 = vector.load %arg10[%c0_1, %c640] : memref<16x768xbf16, #tpu.memory_space<vmem>>, vector<16x128xbf16>
    tpu.vector_store %arg10[%c0_1, %c640], %0 {strides = array<i32>} : memref<16x768xbf16, #tpu.memory_space<vmem>>, vector<16x128xbf16>,
    %c0_2 = arith.constant 0 : index
    %c0_3 = arith.constant 0 : index
    %3 = vector.load %arg1[%c0_2, %c0_3] : memref<16x512xf32, #tpu.memory_space<vmem>>, vector<16x512xf32>
    %4 = arith.truncf %3 : vector<16x512xf32> to vector<16x512xbf16>
    %c0_4 = arith.constant 0 : index
    %c128 = arith.constant 128 : index
    %5 = vector.load %arg10[%c0_4, %c128] : memref<16x768xbf16, #tpu.memory_space<vmem>>, vector<16x512xbf16>
    tpu.vector_store %arg10[%c0_4, %c128], %4 {strides = array<i32>} : memref<16x768xbf16, #tpu.memory_space<vmem>>, vector<16x512xbf16>,
    %c0_5 = arith.constant 0 : index
    %c111 = arith.constant 111 : index
    %6 = vector.load %arg10[%c0_5, %c111] : memref<16x768xbf16, #tpu.memory_space<vmem>>, vector<16x512xbf16>
    %c0_6 = arith.constant 0 : index
    %c0_7 = arith.constant 0 : index
    %7 = vector.load %arg4[%c0_6, %c0_7] : memref<9x512xbf16, #tpu.memory_space<vmem>>, vector<1x512xbf16>
    %8 = vector.broadcast %7 : vector<1x512xbf16> to vector<16x512xbf16>
    %9 = arith.mulf %6, %8 : vector<16x512xbf16>
    %c0_8 = arith.constant 0 : index
    %c0_9 = arith.constant 0 : index
    %10 = vector.load %arg11[%c0_8, %c0_9] : memref<144x512xbf16, #tpu.memory_space<vmem>>, vector<16x512xbf16>
    tpu.vector_store %arg11[%c0_8, %c0_9], %9 {strides = array<i32>} : memref<144x512xbf16, #tpu.memory_space<vmem>>, vector<16x512xbf16>,
    %c0_10 = arith.constant 0 : index
    %c112 = arith.constant 112 : index
    %11 = vector.load %arg10[%c0_10, %c112] : memref<16x768xbf16, #tpu.memory_space<vmem>>, vector<16x512xbf16>
    %c1 = arith.constant 1 : index
    %c0_11 = arith.constant 0 : index
    %12 = vector.load %arg4[%c1, %c0_11] : memref<9x512xbf16, #tpu.memory_space<vmem>>, vector<1x512xbf16>
    %13 = vector.broadcast %12 : vector<1x512xbf16> to vector<16x512xbf16>
    %14 = arith.mulf %11, %13 : vector<16x512xbf16>
    %c16 = arith.constant 16 : index
    %c0_12 = arith.constant 0 : index
    %15 = vector.load %arg11[%c16, %c0_12] : memref<144x512xbf16, #tpu.memory_space<vmem>>, vector<16x512xbf16>
    tpu.vector_store %arg11[%c16, %c0_12], %14 {strides = array<i32>} : memref<144x512xbf16, #tpu.memory_space<vmem>>, vector<16x512xbf16>,
    %c0_13 = arith.constant 0 : index
    %c113 = arith.constant 113 : index
    %16 = vector.load %arg10[%c0_13, %c113] : memref<16x768xbf16, #tpu.memory_space<vmem>>, vector<16x512xbf16>
    %c2 = arith.constant 2 : index
    %c0_14 = arith.constant 0 : index
    %17 = vector.load %arg4[%c2, %c0_14] : memref<9x512xbf16, #tpu.memory_space<vmem>>, vector<1x512xbf16>
    %18 = vector.broadcast %17 : vector<1x512xbf16> to vector<16x512xbf16>
    %19 = arith.mulf %16, %18 : vector<16x512xbf16>
    %c32 = arith.constant 32 : index
    %c0_15 = arith.constant 0 : index
    %20 = vector.load %arg11[%c32, %c0_15] : memref<144x512xbf16, #tpu.memory_space<vmem>>, vector<16x512xbf16>
    tpu.vector_store %arg11[%c32, %c0_15], %19 {strides = array<i32>} : memref<144x512xbf16, #tpu.memory_space<vmem>>, vector<16x512xbf16>,
    %c0_16 = arith.constant 0 : index
    %c127 = arith.constant 127 : index
    %21 = vector.load %arg10[%c0_16, %c127] : memref<16x768xbf16, #tpu.memory_space<vmem>>, vector<16x512xbf16>
    %c3 = arith.constant 3 : index
    %c0_17 = arith.constant 0 : index
    %22 = vector.load %arg4[%c3, %c0_17] : memref<9x512xbf16, #tpu.memory_space<vmem>>, vector<1x512xbf16>
    %23 = vector.broadcast %22 : vector<1x512xbf16> to vector<16x512xbf16>
    %24 = arith.mulf %21, %23 : vector<16x512xbf16>
    %c48 = arith.constant 48 : index
    %c0_18 = arith.constant 0 : index
    %25 = vector.load %arg11[%c48, %c0_18] : memref<144x512xbf16, #tpu.memory_space<vmem>>, vector<16x512xbf16>
    tpu.vector_store %arg11[%c48, %c0_18], %24 {strides = array<i32>} : memref<144x512xbf16, #tpu.memory_space<vmem>>, vector<16x512xbf16>,
    %c0_19 = arith.constant 0 : index
    %c128_20 = arith.constant 128 : index
    %26 = vector.load %arg10[%c0_19, %c128_20] : memref<16x768xbf16, #tpu.memory_space<vmem>>, vector<16x512xbf16>
    %c64 = arith.constant 64 : index
    %c0_21 = arith.constant 0 : index
    %27 = vector.load %arg11[%c64, %c0_21] : memref<144x512xbf16, #tpu.memory_space<vmem>>, vector<16x512xbf16>
    tpu.vector_store %arg11[%c64, %c0_21], %26 {strides = array<i32>} : memref<144x512xbf16, #tpu.memory_space<vmem>>, vector<16x512xbf16>,
    %c0_22 = arith.constant 0 : index
    %c129 = arith.constant 129 : index
    %28 = vector.load %arg10[%c0_22, %c129] : memref<16x768xbf16, #tpu.memory_space<vmem>>, vector<16x512xbf16>
    %c5 = arith.constant 5 : index
    %c0_23 = arith.constant 0 : index
    %29 = vector.load %arg4[%c5, %c0_23] : memref<9x512xbf16, #tpu.memory_space<vmem>>, vector<1x512xbf16>
    %30 = vector.broadcast %29 : vector<1x512xbf16> to vector<16x512xbf16>
    %31 = arith.mulf %28, %30 : vector<16x512xbf16>
    %c80 = arith.constant 80 : index
    %c0_24 = arith.constant 0 : index
    %32 = vector.load %arg11[%c80, %c0_24] : memref<144x512xbf16, #tpu.memory_space<vmem>>, vector<16x512xbf16>
    tpu.vector_store %arg11[%c80, %c0_24], %31 {strides = array<i32>} : memref<144x512xbf16, #tpu.memory_space<vmem>>, vector<16x512xbf16>,
    %c0_25 = arith.constant 0 : index
    %c143 = arith.constant 143 : index
    %33 = vector.load %arg10[%c0_25, %c143] : memref<16x768xbf16, #tpu.memory_space<vmem>>, vector<16x512xbf16>
    %c6 = arith.constant 6 : index
    %c0_26 = arith.constant 0 : index
    %34 = vector.load %arg4[%c6, %c0_26] : memref<9x512xbf16, #tpu.memory_space<vmem>>, vector<1x512xbf16>
    %35 = vector.broadcast %34 : vector<1x512xbf16> to vector<16x512xbf16>
    %36 = arith.mulf %33, %35 : vector<16x512xbf16>
    %c96 = arith.constant 96 : index
    %c0_27 = arith.constant 0 : index
    %37 = vector.load %arg11[%c96, %c0_27] : memref<144x512xbf16, #tpu.memory_space<vmem>>, vector<16x512xbf16>
    tpu.vector_store %arg11[%c96, %c0_27], %36 {strides = array<i32>} : memref<144x512xbf16, #tpu.memory_space<vmem>>, vector<16x512xbf16>,
    %c0_28 = arith.constant 0 : index
    %c144 = arith.constant 144 : index
    %38 = vector.load %arg10[%c0_28, %c144] : memref<16x768xbf16, #tpu.memory_space<vmem>>, vector<16x512xbf16>
    %c7 = arith.constant 7 : index
    %c0_29 = arith.constant 0 : index
    %39 = vector.load %arg4[%c7, %c0_29] : memref<9x512xbf16, #tpu.memory_space<vmem>>, vector<1x512xbf16>
    %40 = vector.broadcast %39 : vector<1x512xbf16> to vector<16x512xbf16>
    %41 = arith.mulf %38, %40 : vector<16x512xbf16>
    %c112_30 = arith.constant 112 : index
    %c0_31 = arith.constant 0 : index
    %42 = vector.load %arg11[%c112_30, %c0_31] : memref<144x512xbf16, #tpu.memory_space<vmem>>, vector<16x512xbf16>
    tpu.vector_store %arg11[%c112_30, %c0_31], %41 {strides = array<i32>} : memref<144x512xbf16, #tpu.memory_space<vmem>>, vector<16x512xbf16>,
    %c0_32 = arith.constant 0 : index
    %c145 = arith.constant 145 : index
    %43 = vector.load %arg10[%c0_32, %c145] : memref<16x768xbf16, #tpu.memory_space<vmem>>, vector<16x512xbf16>
    %c8 = arith.constant 8 : index
    %c0_33 = arith.constant 0 : index
    %44 = vector.load %arg4[%c8, %c0_33] : memref<9x512xbf16, #tpu.memory_space<vmem>>, vector<1x512xbf16>
    %45 = vector.broadcast %44 : vector<1x512xbf16> to vector<16x512xbf16>
    %46 = arith.mulf %43, %45 : vector<16x512xbf16>
    %c128_34 = arith.constant 128 : index
    %c0_35 = arith.constant 0 : index
    %47 = vector.load %arg11[%c128_34, %c0_35] : memref<144x512xbf16, #tpu.memory_space<vmem>>, vector<16x512xbf16>
    tpu.vector_store %arg11[%c128_34, %c0_35], %46 {strides = array<i32>} : memref<144x512xbf16, #tpu.memory_space<vmem>>, vector<16x512xbf16>,
    %c0_36 = arith.constant 0 : index
    %c0_37 = arith.constant 0 : index
    %48 = vector.load %arg2[%c0_36, %c0_37] : memref<16x144xbf16, #tpu.memory_space<vmem>>, vector<16x144xbf16>
    %c0_38 = arith.constant 0 : index
    %c0_39 = arith.constant 0 : index
    %49 = vector.load %arg11[%c0_38, %c0_39] : memref<144x512xbf16, #tpu.memory_space<vmem>>, vector<144x512xbf16>
    %cst_40 = arith.constant dense<0.000000e+00> : vector<16x512xf32>
    %50 = tpu.matmul %48, %49, %cst_40 {dimension_numbers = #tpu.dot_dimension_numbers<[1], [0], [0], [1], [0, 0, 1, 1], [], []>} : vector<16x144xbf16>, vector<144x512xbf16>, vector<16x512xf32> -> vector<16x512xf32>
    %c0_41 = arith.constant 0 : index
    %c0_42 = arith.constant 0 : index
    %51 = vector.load %arg5[%c0_41, %c0_42] : memref<16x1xf32, #tpu.memory_space<vmem>>, vector<16x1xf32>
    %c0_43 = arith.constant 0 : index
    %c0_44 = arith.constant 0 : index
    %52 = vector.load %arg6[%c0_43, %c0_44] : memref<16x1xf32, #tpu.memory_space<vmem>>, vector<16x1xf32>
    %cst_45 = arith.constant dense<0.000000e+00> : vector<16xf32>
    %53 = vector.multi_reduction <add>, %50, %cst_45 [1] : vector<16x512xf32> to vector<16xf32>
    %54 = vector.shape_cast %53 : vector<16xf32> to vector<16x1xf32>
    %cst_46 = arith.constant 0.001953125 : f32
    %55 = vector.broadcast %cst_46 : f32 to vector<16x1xf32>
    %56 = arith.mulf %54, %55 : vector<16x1xf32>
    %57 = vector.broadcast %56 : vector<16x1xf32> to vector<16x512xf32>
    %58 = arith.subf %50, %57 : vector<16x512xf32>
    %59 = arith.mulf %58, %58 : vector<16x512xf32>
    %cst_47 = arith.constant dense<0.000000e+00> : vector<16xf32>
    %60 = vector.multi_reduction <add>, %59, %cst_47 [1] : vector<16x512xf32> to vector<16xf32>
    %61 = vector.shape_cast %60 : vector<16xf32> to vector<16x1xf32>
    %cst_48 = arith.constant 0.001953125 : f32
    %62 = vector.broadcast %cst_48 : f32 to vector<16x1xf32>
    %63 = arith.mulf %61, %62 : vector<16x1xf32>
    %cst_49 = arith.constant 9.99999974E-6 : f32
    %64 = vector.broadcast %cst_49 : f32 to vector<16x1xf32>
    %65 = arith.addf %63, %64 : vector<16x1xf32>
    %66 = math.rsqrt %65 : vector<16x1xf32>
    %67 = arith.mulf %51, %66 : vector<16x1xf32>
    %68 = vector.broadcast %67 : vector<16x1xf32> to vector<16x512xf32>
    %69 = arith.mulf %58, %68 : vector<16x512xf32>
    %70 = vector.broadcast %52 : vector<16x1xf32> to vector<16x512xf32>
    %71 = arith.addf %69, %70 : vector<16x512xf32>
    %cst_50 = arith.constant 0.000000e+00 : f32
    %72 = vector.broadcast %cst_50 : f32 to vector<16x512xf32>
    %73 = arith.maximumf %71, %72 : vector<16x512xf32>
    %74 = arith.truncf %73 : vector<16x512xf32> to vector<16x512xbf16>
    %c0_51 = arith.constant 0 : index
    %c128_52 = arith.constant 128 : index
    %75 = vector.load %arg10[%c0_51, %c128_52] : memref<16x768xbf16, #tpu.memory_space<vmem>>, vector<16x512xbf16>
    tpu.vector_store %arg10[%c0_51, %c128_52], %74 {strides = array<i32>} : memref<16x768xbf16, #tpu.memory_space<vmem>>, vector<16x512xbf16>,
    %c0_53 = arith.constant 0 : index
    %c111_54 = arith.constant 111 : index
    %76 = vector.load %arg10[%c0_53, %c111_54] : memref<16x768xbf16, #tpu.memory_space<vmem>>, vector<16x512xbf16>
    %c0_55 = arith.constant 0 : index
    %c0_56 = arith.constant 0 : index
    %77 = vector.load %arg4[%c0_55, %c0_56] : memref<9x512xbf16, #tpu.memory_space<vmem>>, vector<1x512xbf16>
    %78 = vector.broadcast %77 : vector<1x512xbf16> to vector<16x512xbf16>
    %79 = arith.mulf %76, %78 : vector<16x512xbf16>
    %c0_57 = arith.constant 0 : index
    %c0_58 = arith.constant 0 : index
    %80 = vector.load %arg11[%c0_57, %c0_58] : memref<144x512xbf16, #tpu.memory_space<vmem>>, vector<16x512xbf16>
    tpu.vector_store %arg11[%c0_57, %c0_58], %79 {strides = array<i32>} : memref<144x512xbf16, #tpu.memory_space<vmem>>, vector<16x512xbf16>,
    %c0_59 = arith.constant 0 : index
    %c112_60 = arith.constant 112 : index
    %81 = vector.load %arg10[%c0_59, %c112_60] : memref<16x768xbf16, #tpu.memory_space<vmem>>, vector<16x512xbf16>
    %c1_61 = arith.constant 1 : index
    %c0_62 = arith.constant 0 : index
    %82 = vector.load %arg4[%c1_61, %c0_62] : memref<9x512xbf16, #tpu.memory_space<vmem>>, vector<1x512xbf16>
    %83 = vector.broadcast %82 : vector<1x512xbf16> to vector<16x512xbf16>
    %84 = arith.mulf %81, %83 : vector<16x512xbf16>
    %c16_63 = arith.constant 16 : index
    %c0_64 = arith.constant 0 : index
    %85 = vector.load %arg11[%c16_63, %c0_64] : memref<144x512xbf16, #tpu.memory_space<vmem>>, vector<16x512xbf16>
    tpu.vector_store %arg11[%c16_63, %c0_64], %84 {strides = array<i32>} : memref<144x512xbf16, #tpu.memory_space<vmem>>, vector<16x512xbf16>,
    %c0_65 = arith.constant 0 : index
    %c113_66 = arith.constant 113 : index
    %86 = vector.load %arg10[%c0_65, %c113_66] : memref<16x768xbf16, #tpu.memory_space<vmem>>, vector<16x512xbf16>
    %c2_67 = arith.constant 2 : index
    %c0_68 = arith.constant 0 : index
    %87 = vector.load %arg4[%c2_67, %c0_68] : memref<9x512xbf16, #tpu.memory_space<vmem>>, vector<1x512xbf16>
    %88 = vector.broadcast %87 : vector<1x512xbf16> to vector<16x512xbf16>
    %89 = arith.mulf %86, %88 : vector<16x512xbf16>
    %c32_69 = arith.constant 32 : index
    %c0_70 = arith.constant 0 : index
    %90 = vector.load %arg11[%c32_69, %c0_70] : memref<144x512xbf16, #tpu.memory_space<vmem>>, vector<16x512xbf16>
    tpu.vector_store %arg11[%c32_69, %c0_70], %89 {strides = array<i32>} : memref<144x512xbf16, #tpu.memory_space<vmem>>, vector<16x512xbf16>,
    %c0_71 = arith.constant 0 : index
    %c127_72 = arith.constant 127 : index
    %91 = vector.load %arg10[%c0_71, %c127_72] : memref<16x768xbf16, #tpu.memory_space<vmem>>, vector<16x512xbf16>
    %c3_73 = arith.constant 3 : index
    %c0_74 = arith.constant 0 : index
    %92 = vector.load %arg4[%c3_73, %c0_74] : memref<9x512xbf16, #tpu.memory_space<vmem>>, vector<1x512xbf16>
    %93 = vector.broadcast %92 : vector<1x512xbf16> to vector<16x512xbf16>
    %94 = arith.mulf %91, %93 : vector<16x512xbf16>
    %c48_75 = arith.constant 48 : index
    %c0_76 = arith.constant 0 : index
    %95 = vector.load %arg11[%c48_75, %c0_76] : memref<144x512xbf16, #tpu.memory_space<vmem>>, vector<16x512xbf16>
    tpu.vector_store %arg11[%c48_75, %c0_76], %94 {strides = array<i32>} : memref<144x512xbf16, #tpu.memory_space<vmem>>, vector<16x512xbf16>,
    %c0_77 = arith.constant 0 : index
    %c128_78 = arith.constant 128 : index
    %96 = vector.load %arg10[%c0_77, %c128_78] : memref<16x768xbf16, #tpu.memory_space<vmem>>, vector<16x512xbf16>
    %c64_79 = arith.constant 64 : index
    %c0_80 = arith.constant 0 : index
    %97 = vector.load %arg11[%c64_79, %c0_80] : memref<144x512xbf16, #tpu.memory_space<vmem>>, vector<16x512xbf16>
    tpu.vector_store %arg11[%c64_79, %c0_80], %96 {strides = array<i32>} : memref<144x512xbf16, #tpu.memory_space<vmem>>, vector<16x512xbf16>,
    %c0_81 = arith.constant 0 : index
    %c129_82 = arith.constant 129 : index
    %98 = vector.load %arg10[%c0_81, %c129_82] : memref<16x768xbf16, #tpu.memory_space<vmem>>, vector<16x512xbf16>
    %c5_83 = arith.constant 5 : index
    %c0_84 = arith.constant 0 : index
    %99 = vector.load %arg4[%c5_83, %c0_84] : memref<9x512xbf16, #tpu.memory_space<vmem>>, vector<1x512xbf16>
    %100 = vector.broadcast %99 : vector<1x512xbf16> to vector<16x512xbf16>
    %101 = arith.mulf %98, %100 : vector<16x512xbf16>
    %c80_85 = arith.constant 80 : index
    %c0_86 = arith.constant 0 : index
    %102 = vector.load %arg11[%c80_85, %c0_86] : memref<144x512xbf16, #tpu.memory_space<vmem>>, vector<16x512xbf16>
    tpu.vector_store %arg11[%c80_85, %c0_86], %101 {strides = array<i32>} : memref<144x512xbf16, #tpu.memory_space<vmem>>, vector<16x512xbf16>,
    %c0_87 = arith.constant 0 : index
    %c143_88 = arith.constant 143 : index
    %103 = vector.load %arg10[%c0_87, %c143_88] : memref<16x768xbf16, #tpu.memory_space<vmem>>, vector<16x512xbf16>
    %c6_89 = arith.constant 6 : index
    %c0_90 = arith.constant 0 : index
    %104 = vector.load %arg4[%c6_89, %c0_90] : memref<9x512xbf16, #tpu.memory_space<vmem>>, vector<1x512xbf16>
    %105 = vector.broadcast %104 : vector<1x512xbf16> to vector<16x512xbf16>
    %106 = arith.mulf %103, %105 : vector<16x512xbf16>
    %c96_91 = arith.constant 96 : index
    %c0_92 = arith.constant 0 : index
    %107 = vector.load %arg11[%c96_91, %c0_92] : memref<144x512xbf16, #tpu.memory_space<vmem>>, vector<16x512xbf16>
    tpu.vector_store %arg11[%c96_91, %c0_92], %106 {strides = array<i32>} : memref<144x512xbf16, #tpu.memory_space<vmem>>, vector<16x512xbf16>,
    %c0_93 = arith.constant 0 : index
    %c144_94 = arith.constant 144 : index
    %108 = vector.load %arg10[%c0_93, %c144_94] : memref<16x768xbf16, #tpu.memory_space<vmem>>, vector<16x512xbf16>
    %c7_95 = arith.constant 7 : index
    %c0_96 = arith.constant 0 : index
    %109 = vector.load %arg4[%c7_95, %c0_96] : memref<9x512xbf16, #tpu.memory_space<vmem>>, vector<1x512xbf16>
    %110 = vector.broadcast %109 : vector<1x512xbf16> to vector<16x512xbf16>
    %111 = arith.mulf %108, %110 : vector<16x512xbf16>
    %c112_97 = arith.constant 112 : index
    %c0_98 = arith.constant 0 : index
    %112 = vector.load %arg11[%c112_97, %c0_98] : memref<144x512xbf16, #tpu.memory_space<vmem>>, vector<16x512xbf16>
    tpu.vector_store %arg11[%c112_97, %c0_98], %111 {strides = array<i32>} : memref<144x512xbf16, #tpu.memory_space<vmem>>, vector<16x512xbf16>,
    %c0_99 = arith.constant 0 : index
    %c145_100 = arith.constant 145 : index
    %113 = vector.load %arg10[%c0_99, %c145_100] : memref<16x768xbf16, #tpu.memory_space<vmem>>, vector<16x512xbf16>
    %c8_101 = arith.constant 8 : index
    %c0_102 = arith.constant 0 : index
    %114 = vector.load %arg4[%c8_101, %c0_102] : memref<9x512xbf16, #tpu.memory_space<vmem>>, vector<1x512xbf16>
    %115 = vector.broadcast %114 : vector<1x512xbf16> to vector<16x512xbf16>
    %116 = arith.mulf %113, %115 : vector<16x512xbf16>
    %c128_103 = arith.constant 128 : index
    %c0_104 = arith.constant 0 : index
    %117 = vector.load %arg11[%c128_103, %c0_104] : memref<144x512xbf16, #tpu.memory_space<vmem>>, vector<16x512xbf16>
    tpu.vector_store %arg11[%c128_103, %c0_104], %116 {strides = array<i32>} : memref<144x512xbf16, #tpu.memory_space<vmem>>, vector<16x512xbf16>,
    %c0_105 = arith.constant 0 : index
    %c0_106 = arith.constant 0 : index
    %118 = vector.load %arg3[%c0_105, %c0_106] : memref<16x144xbf16, #tpu.memory_space<vmem>>, vector<16x144xbf16>
    %c0_107 = arith.constant 0 : index
    %c0_108 = arith.constant 0 : index
    %119 = vector.load %arg11[%c0_107, %c0_108] : memref<144x512xbf16, #tpu.memory_space<vmem>>, vector<144x512xbf16>
    %cst_109 = arith.constant dense<0.000000e+00> : vector<16x512xf32>
    %120 = tpu.matmul %118, %119, %cst_109 {dimension_numbers = #tpu.dot_dimension_numbers<[1], [0], [0], [1], [0, 0, 1, 1], [], []>} : vector<16x144xbf16>, vector<144x512xbf16>, vector<16x512xf32> -> vector<16x512xf32>
    %c0_110 = arith.constant 0 : index
    %c0_111 = arith.constant 0 : index
    %121 = vector.load %arg7[%c0_110, %c0_111] : memref<16x1xf32, #tpu.memory_space<vmem>>, vector<16x1xf32>
    %c0_112 = arith.constant 0 : index
    %c0_113 = arith.constant 0 : index
    %122 = vector.load %arg8[%c0_112, %c0_113] : memref<16x1xf32, #tpu.memory_space<vmem>>, vector<16x1xf32>
    %cst_114 = arith.constant dense<0.000000e+00> : vector<16xf32>
    %123 = vector.multi_reduction <add>, %120, %cst_114 [1] : vector<16x512xf32> to vector<16xf32>
    %124 = vector.shape_cast %123 : vector<16xf32> to vector<16x1xf32>
    %cst_115 = arith.constant 0.001953125 : f32
    %125 = vector.broadcast %cst_115 : f32 to vector<16x1xf32>
    %126 = arith.mulf %124, %125 : vector<16x1xf32>
    %127 = vector.broadcast %126 : vector<16x1xf32> to vector<16x512xf32>
    %128 = arith.subf %120, %127 : vector<16x512xf32>
    %129 = arith.mulf %128, %128 : vector<16x512xf32>
    %cst_116 = arith.constant dense<0.000000e+00> : vector<16xf32>
    %130 = vector.multi_reduction <add>, %129, %cst_116 [1] : vector<16x512xf32> to vector<16xf32>
    %131 = vector.shape_cast %130 : vector<16xf32> to vector<16x1xf32>
    %cst_117 = arith.constant 0.001953125 : f32
    %132 = vector.broadcast %cst_117 : f32 to vector<16x1xf32>
    %133 = arith.mulf %131, %132 : vector<16x1xf32>
    %cst_118 = arith.constant 9.99999974E-6 : f32
    %134 = vector.broadcast %cst_118 : f32 to vector<16x1xf32>
    %135 = arith.addf %133, %134 : vector<16x1xf32>
    %136 = math.rsqrt %135 : vector<16x1xf32>
    %137 = arith.mulf %121, %136 : vector<16x1xf32>
    %138 = vector.broadcast %137 : vector<16x1xf32> to vector<16x512xf32>
    %139 = arith.mulf %128, %138 : vector<16x512xf32>
    %140 = vector.broadcast %122 : vector<16x1xf32> to vector<16x512xf32>
    %141 = arith.addf %139, %140 : vector<16x512xf32>
    %c0_119 = arith.constant 0 : index
    %c0_120 = arith.constant 0 : index
    %142 = vector.load %arg1[%c0_119, %c0_120] : memref<16x512xf32, #tpu.memory_space<vmem>>, vector<16x512xf32>
    %143 = arith.addf %141, %142 : vector<16x512xf32>
    %cst_121 = arith.constant 0.000000e+00 : f32
    %144 = vector.broadcast %cst_121 : f32 to vector<16x512xf32>
    %145 = arith.maximumf %143, %144 : vector<16x512xf32>
    %c0_122 = arith.constant 0 : index
    %c0_123 = arith.constant 0 : index
    %146 = vector.load %arg9[%c0_122, %c0_123] : memref<16x512xf32, #tpu.memory_space<vmem>>, vector<16x512xf32>
    tpu.vector_store %arg9[%c0_122, %c0_123], %145 {strides = array<i32>} : memref<16x512xf32, #tpu.memory_space<vmem>>, vector<16x512xf32>,
    return
  }
  func.func @transform_0(%arg0: i32) -> (i32, i32) {
    %c0_i32 = arith.constant 0 : i32
    %c0_i32_0 = arith.constant 0 : i32
    %c0_i32_1 = arith.constant 0 : i32
    return %c0_i32, %c0_i32_0 : i32, i32
  }
  func.func @transform_1(%arg0: i32) -> (i32, i32) {
    %c0_i32 = arith.constant 0 : i32
    %c0_i32_0 = arith.constant 0 : i32
    %c0_i32_1 = arith.constant 0 : i32
    return %c0_i32, %c0_i32_0 : i32, i32
  }
  func.func @transform_2(%arg0: i32) -> (i32, i32) {
    %c0_i32 = arith.constant 0 : i32
    %c0_i32_0 = arith.constant 0 : i32
    %c0_i32_1 = arith.constant 0 : i32
    return %c0_i32, %c0_i32_0 : i32, i32
  }
  func.func @transform_3(%arg0: i32) -> (i32, i32) {
    %c0_i32 = arith.constant 0 : i32
    %c0_i32_0 = arith.constant 0 : i32
    %c0_i32_1 = arith.constant 0 : i32
    return %c0_i32, %c0_i32_0 : i32, i32
  }
  func.func @transform_4(%arg0: i32) -> (i32, i32) {
    %c0_i32 = arith.constant 0 : i32
    %c0_i32_0 = arith.constant 0 : i32
    %c0_i32_1 = arith.constant 0 : i32
    return %c0_i32, %c0_i32_0 : i32, i32
  }
  func.func @transform_5(%arg0: i32) -> (i32, i32) {
    %c0_i32 = arith.constant 0 : i32
    %c0_i32_0 = arith.constant 0 : i32
    %c0_i32_1 = arith.constant 0 : i32
    return %c0_i32, %c0_i32_0 : i32, i32
  }
  func.func @transform_6(%arg0: i32) -> (i32, i32) {
    %c0_i32 = arith.constant 0 : i32
    %c0_i32_0 = arith.constant 0 : i32
    %c0_i32_1 = arith.constant 0 : i32
    return %c0_i32, %c0_i32_0 : i32, i32
  }
  func.func @transform_7(%arg0: i32) -> (i32, i32) {
    %c0_i32 = arith.constant 0 : i32
    %c0_i32_0 = arith.constant 0 : i32
    %c0_i32_1 = arith.constant 0 : i32
    return %c0_i32, %c0_i32_0 : i32, i32
  }
  func.func @transform_8(%arg0: i32) -> (i32, i32) {
    %c0_i32 = arith.constant 0 : i32
    %c0_i32_0 = arith.constant 0 : i32
    %c0_i32_1 = arith.constant 0 : i32
    return %c0_i32, %c0_i32_0 : i32, i32
  }
}

</mosaic_0001>

<bundles_post_ra>
// kernel: tpu_custom_call.1
= control target key start
LH: loop header
LB: loop body
LE: loop exit
PB: predicated region body
PF: predicated region fallthrough
CT: control target
= control target key end

     0   :  { %13 = vsyncpa [#allocation5], 0  ;;  %s4205_s0 = inlined_call_operand.vmem [shape: f32[16,512], index: 0, kind: input, shape index: {}]   ;;  %s4206_s1 = inlined_call_operand.hbm [shape: bf16[16,144], index: 1, kind: input, shape index: {}]   ;;  %s4207_s2 = inlined_call_operand.hbm [shape: bf16[16,144], index: 2, kind: input, shape index: {}]   ;;  %s4208_s3 = inlined_call_operand.hbm [shape: bf16[9,512], index: 3, kind: input, shape index: {}]   ;;  %s4209_s4 = inlined_call_operand.vmem [shape: f32[16,1], index: 4, kind: input, shape index: {}]   ;;  %s4210_s5 = inlined_call_operand.vmem [shape: f32[16,1], index: 5, kind: input, shape index: {}]   ;;  %s4211_s6 = inlined_call_operand.vmem [shape: f32[16,1], index: 6, kind: input, shape index: {}]   ;;  %s4212_s7 = inlined_call_operand.vmem [shape: f32[16,1], index: 7, kind: input, shape index: {}]   ;;  %s4213_s8 = inlined_call_operand.hbm [shape: f32[16,512], index: 8, kind: output, shape index: {}]  }
   0x1   :  { %14 = vsyncpa [#allocation8], 0 }
   0x2   :  { %15 = vsyncpa [#allocation6], 0  ;;  %s3268_s27 = smov [#allocation7]   ;;  %s3269_s29 = smov [#allocation4]  }
   0x3   :  { %s35_s28 = sshll.u32 %s3268_s27, 4  ;;  %s23_s30 = sshll.u32 %s3269_s29, 4  ;;  %s36_s28 = int_to_ptr.vmem [resolvable:$true] %s35_s28  ;;  %s24_s30 = int_to_ptr.vmem [resolvable:$true] %s23_s30 }
   0x4   :  { %s3190_s9 = scalar_lea.vmem %s36_s28, 256  ;;  %p3195_p1 = scmp.lt.s32.totalorder %s36_s28, %s36_s28 }
   0x5   :  { %p3191_p0 = scmp.ne.s32.totalorder %s36_s28, %s3190_s9  ;;  %p3196_p2 = scmp.lt.s32.totalorder %s3190_s9, %s3190_s9 }
   0x7   :  { %p3197_p3 = por %p3196_p2, %p3195_p1 }
   0x9   :  { %p3198_p4 = pnand %p3197_p3, %p3191_p0 }
   0xb   :  { %3201 = shalt.err (!%p3198_p4)
}
   0xc   :  { %s3270_s10 = smov 128   ;;  %s3271_s11 = smov 8  }
   0xd   :  { %41 = dma.hbm_to_vmem [thread:$0]  %s4207_s2, 256, %s36_s28, [#allocation8], %s3270_s10, %s3270_s10, %s3271_s11  }
   0xe   :  { %s3210_s14 = scalar_lea.vmem %s24_s30, 256  ;;  %p3215_p6 = scmp.lt.s32.totalorder %s24_s30, %s24_s30 }
   0xf   :  { %p3211_p5 = scmp.ne.s32.totalorder %s24_s30, %s3210_s14  ;;  %p3216_p7 = scmp.lt.s32.totalorder %s3210_s14, %s3210_s14 }
  0x11   :  { %p3217_p8 = por %p3216_p7, %p3215_p6 }
  0x13   :  { %p3218_p9 = pnand %p3217_p8, %p3211_p5 }
  0x15   :  { %3221 = shalt.err (!%p3218_p9)
}
  0x16   :  { %29 = dma.hbm_to_vmem [thread:$0]  %s4206_s1, 256, %s24_s30, [#allocation5], %s3270_s10, %s3270_s10, %s3271_s11  }
  0x17   :  { %s3272_s17 = smov [#allocation9]  }
  0x18   :  { %s47_s18 = sshll.u32 %s3272_s17, 4  ;;  %s48_s18 = int_to_ptr.vmem [resolvable:$true] %s47_s18 }
  0x19   :  { %s3230_s19 = scalar_lea.vmem %s48_s18, 512  ;;  %p3235_p11 = scmp.lt.s32.totalorder %s48_s18, %s48_s18 }
  0x1a   :  { %p3231_p10 = scmp.ne.s32.totalorder %s48_s18, %s3230_s19  ;;  %p3236_p12 = scmp.lt.s32.totalorder %s3230_s19, %s3230_s19 }
  0x1c   :  { %p3237_p13 = por %p3236_p12, %p3235_p11 }
  0x1e   :  { %p3238_p0 = pnand %p3237_p13, %p3231_p10 }
  0x20   :  { %3241 = shalt.err (!%p3238_p0)
}
  0x21   :  { %s3273_s2 = smov 256   ;;  %s3274_s20 = smov 16  }
  0x22   :  { %53 = dma.hbm_to_vmem [thread:$0]  %s4208_s3, 512, %s48_s18, [#allocation8], %s3273_s2, %s3273_s2, %s3274_s20  }
  0x23   :  { %3262 = dma.done.wait [#allocation5], 256  }
  0x24   :  { %3263 = vsyncadd [#allocation5], 4294967040 }
  0x25   :  { %3264 = dma.done.wait [#allocation8], 768  }
  0x26   :  { %3265 = vsyncadd [#allocation8], 4294966528  ;;  %v133_v0 = vlaneseq  ;;  %v3275_v2 = vmov 0   ;;  %v717_v6 = vld [vmem:[#allocation9] sm:$0x88]  ;;  %s3276_s1 = smov 15  }
  0x27   :  { %75 = vst [vmem:[#allocation2 + $0x2c] sm:$0xf] %v3275_v2  ;;  %72 = vst [vmem:[#allocation2] sm:$0xf] %v3275_v2  ;;  %3094 = vset.pattern.permute.xlu1 %v3275_v2  ;;  %3095 = vset.pattern.permute.xlu0 %v3275_v2  ;;  %v355_v7 = vld [vmem:[#allocation9] sm:$0x22]  ;;  %v2918_v9 = vcombine.low %v717_v6, %v717_v6  ;;  %v2919_v10 = vcombine.high %v717_v6, %v717_v6 }
  0x28   :  { %v134_v1 = vshrl.u32 %v133_v0, 7  ;;  %73 = vst [vmem:[#allocation2 + $0x18] sm:$0xf] %v3275_v2  ;;  %74 = vst [vmem:[#allocation2 + $0x14] sm:$0xf] %v3275_v2  ;;  %v2900_v11 = vcombine.low %v355_v7, %v355_v7  ;;  %v2901_v12 = vcombine.high %v355_v7, %v355_v7  ;;  %s3277_s3 = smov 113  }
  0x29   :  { %v718_v8 = vld [vmem:[#allocation9 + $0x8] sm:$0x88]  ;;  %v831_v13 = vld [vmem:[#allocation9] sm:$0x88]  ;;  %v730_v18 = vpack.i.b16 %v2918_v9, %v2918_v9  ;;  %v737_v19 = vpack.i.b16 %v2919_v10, %v2919_v10  ;;  %v356_v26 = vld [vmem:[#allocation9 + $0x8] sm:$0x22] }
  0x2a   :  { %v3341_v3 = vsub.s32 0, %v134_v1  ;;  %v3343_v4 = vsub.s32 3, %v134_v1  ;;  %v3345_v5 = vsub.s32 1, %v134_v1  ;;  %v2920_v14 = vcombine.low %v718_v8, %v718_v8  ;;  %v832_v31 = vld [vmem:[#allocation9 + $0x8] sm:$0x88]  ;;  %s3278_s23 = smov 1  }
  0x2b   :  { %v2921_v15 = vcombine.high %v718_v8, %v718_v8  ;;  %v2924_v16 = vcombine.low %v831_v13, %v831_v13  ;;  %v2925_v17 = vcombine.high %v831_v13, %v831_v13  ;;  %v368_v20 = vpack.i.b16 %v2900_v11, %v2900_v11  ;;  %v600_v40 = vld [vmem:[#allocation9 + $0x8] sm:$0x44]  ;;  %v599_v45 = vld [vmem:[#allocation9] sm:$0x44]  ;;  %v472_v54 = vld [vmem:[#allocation9 + $0x8] sm:$0x22] }
  0x2c   :  { %v375_v21 = vpack.i.b16 %v2901_v12, %v2901_v12  ;;  %v744_v22 = vpack.i.b16 %v2920_v14, %v2920_v14  ;;  %v735_v27 = vrot.slane %v730_v18, %v3343_v4  ;;  %v742_v28 = vrot.slane %v737_v19, %v3343_v4  ;;  %v471_v6 = vld [vmem:[#allocation9] sm:$0x22]  ;;  %v236_v19 = vld [vmem:[#allocation9 + $0x8] sm:$0x11]  ;;  %s3279_s24 = smov 127   ;;  %s3280_s29 = smov 112  }
  0x2d   :  { %v751_v23 = vpack.i.b16 %v2921_v15, %v2921_v15  ;;  %v844_v24 = vshrl.u32 %v2924_v16, 16  ;;  %v852_v25 = vshrl.u32 %v2925_v17, 16  ;;  %v373_v29 = vrot.slane %v368_v20, %v3345_v5  ;;  %s3281_s2 = smov 111   ;;  %s3282_s21 = smov 17  }
  0x2e   :  { %v380_v30 = vrot.slane %v375_v21, %v3345_v5  ;;  %v749_v32 = vrot.slane %v744_v22, %v3343_v4  ;;  %v2922_v36 = vcombine.low %v735_v27, %v742_v28  ;;  %v2902_v38 = vcombine.low %v356_v26, %v356_v26  ;;  %s3283_s27 = smov [#allocation10]  }
  0x2f   :  { %v756_v33 = vrot.slane %v751_v23, %v3343_v4  ;;  %v845_v34 = vpack.i.b16 %v844_v24, %v844_v24  ;;  %v853_v35 = vpack.i.b16 %v852_v25, %v852_v25  ;;  %v2903_v39 = vcombine.high %v356_v26, %v356_v26  ;;  %v235_v24 = vld [vmem:[#allocation9] sm:$0x11]  ;;  %s2871_s28 = sshll.u32 %s3283_s27, 4  ;;  %s2872_s28 = int_to_ptr.vmem [resolvable:$true] %s2871_s28 }
  0x30   :  { %v2904_v37 = vcombine.low %v373_v29, %v380_v30  ;;  %v2926_v44 = vcombine.low %v832_v31, %v832_v31  ;;  %767 = vrot.lane.b32.xlu1 %v2922_v36, %s3276_s1  ;;  %v382_v46 = vpack.i.b16 %v2902_v38, %v2902_v38  ;;  %v2927_v48 = vcombine.high %v832_v31, %v832_v31  ;;  %p3247_p2 = scmp.lt.s32.totalorder %s2872_s28, %s2872_s28 }
  0x31   :  { %v2923_v41 = vcombine.low %v749_v32, %v756_v33  ;;  %v850_v42 = vrot.slane %v845_v34, %v3343_v4  ;;  %v858_v43 = vrot.slane %v853_v35, %v3343_v4  ;;  %v389_v47 = vpack.i.b16 %v2903_v39, %v2903_v39  ;;  %v119_v33 = vld [vmem:[#allocation9 + $0x8] sm:$0x11] }
  0x32   :  { %405 = vrot.lane.b32.xlu0 %v2904_v37, %s3277_s3  ;;  %v3357_v49 = vsub.s32 2, %v134_v1  ;;  %v860_v51 = vshrl.u32 %v2926_v44, 16  ;;  %v2914_v52 = vcombine.low %v600_v40, %v600_v40  ;;  %v2915_v53 = vcombine.high %v600_v40, %v600_v40 }
  0x33   :  { %v2928_v50 = vcombine.low %v850_v42, %v858_v43  ;;  %v387_v55 = vrot.slane %v382_v46, %v3345_v5  ;;  %v394_v56 = vrot.slane %v389_v47, %v3345_v5  ;;  %v868_v57 = vshrl.u32 %v2927_v48, 16  ;;  %v118_v46 = vld [vmem:[#allocation9] sm:$0x11] }
  0x34   :  { %v2912_v58 = vcombine.low %v599_v45, %v599_v45  ;;  %v861_v59 = vpack.i.b16 %v860_v51, %v860_v51  ;;  %v628_v60 = vshrl.u32 %v2914_v52, 16  ;;  %v636_v61 = vshrl.u32 %v2915_v53, 16  ;;  %769 = vrot.lane.b32.xlu1 %v2923_v41, %s3276_s1 }
  0x35   :  { %v2913_v62 = vcombine.high %v599_v45, %v599_v45  ;;  %v2905_v63 = vcombine.low %v387_v55, %v394_v56  ;;  %v869_v0 = vpack.i.b16 %v868_v57, %v868_v57  ;;  %v2908_v2 = vcombine.low %v472_v54, %v472_v54 }
  0x36   :  { %885 = vrot.lane.b32.xlu0 %v2928_v50, %s3274_s20  ;;  %v612_v1 = vshrl.u32 %v2912_v58, 16  ;;  %v866_v7 = vrot.slane %v861_v59, %v3343_v4  ;;  %v629_v8 = vpack.i.b16 %v628_v60, %v628_v60  ;;  %v637_v9 = vpack.i.b16 %v636_v61, %v636_v61  ;;  %v950_v60 = vld [vmem:[#allocation9 + $0x18] sm:$0x11]  ;;  %v949_v61 = vld [vmem:[#allocation9 + $0x10] sm:$0x11] }
  0x37   :  { %v620_v10 = vshrl.u32 %v2913_v62, 16  ;;  %v874_v11 = vrot.slane %v869_v0, %v3343_v4  ;;  %v2909_v13 = vcombine.high %v472_v54, %v472_v54  ;;  %v500_v14 = vshrl.u32 %v2908_v2, 16 }
  0x38   :  { %v613_v12 = vpack.i.b16 %v612_v1, %v612_v1  ;;  %v634_v15 = vrot.slane %v629_v8, %v3357_v49  ;;  %v642_v16 = vrot.slane %v637_v9, %v3357_v49  ;;  %v2906_v18 = vcombine.low %v471_v6, %v471_v6  ;;  %407 = vrot.lane.b32.xlu1 %v2905_v63, %s3277_s3 }
  0x39   :  { %v621_v17 = vpack.i.b16 %v620_v10, %v620_v10  ;;  %v2929_v20 = vcombine.low %v866_v7, %v874_v11  ;;  %v501_v22 = vpack.i.b16 %v500_v14, %v500_v14  ;;  %v508_v23 = vshrl.u32 %v2909_v13, 16  ;;  %v3388_v13 = vld [vmem:[%s4205_s0 + $0x30] sm:$0xff]  ;;  %v3393_v14 = vld [vmem:[%s4205_s0 + $0x38] sm:$0xff] }
  0x3a   :  { %v618_v21 = vrot.slane %v613_v12, %v3357_v49  ;;  %v2917_v25 = vcombine.low %v634_v15, %v642_v16  ;;  %v2907_v27 = vcombine.high %v471_v6, %v471_v6  ;;  %v484_v28 = vshrl.u32 %v2906_v18, 16 }
  0x3b   :  { %v626_v26 = vrot.slane %v621_v17, %v3357_v49  ;;  %887 = vrot.lane.b32.xlu0 %v2929_v20, %s3274_s20  ;;  %v506_v29 = vrot.slane %v501_v22, %v3345_v5  ;;  %v509_v30 = vpack.i.b16 %v508_v23, %v508_v23  ;;  %v2896_v31 = vcombine.low %v236_v19, %v236_v19  ;;  %v3405_v20 = vld [vmem:[%s4205_s0 + $0x18] sm:$0xff] }
  0x3c   :  { %v2897_v32 = vcombine.high %v236_v19, %v236_v19  ;;  %v485_v35 = vpack.i.b16 %v484_v28, %v484_v28  ;;  %v492_v36 = vshrl.u32 %v2907_v27, 16  ;;  %v2894_v37 = vcombine.low %v235_v24, %v235_v24  ;;  %655 = vrot.lane.b32.xlu1 %v2917_v25, %s3278_s23  ;;  %v3400_v19 = vld [vmem:[%s4205_s0 + $0x10] sm:$0xff]  ;;  %v3410_v25 = vld [vmem:[%s4205_s0] sm:$0xff] }
  0x3d   :  { %v2916_v34 = vcombine.low %v618_v21, %v626_v26  ;;  %v514_v38 = vrot.slane %v509_v30, %v3345_v5  ;;  %v264_v39 = vshrl.u32 %v2896_v31, 16  ;;  %v2895_v41 = vcombine.high %v235_v24, %v235_v24  ;;  %v3425_v30 = vld [vmem:[%s4205_s0 + $0x20] sm:$0xff]  ;;  %v3430_v31 = vld [vmem:[%s4205_s0 + $0x28] sm:$0xff] }
  0x3e   :  { %v272_v40 = vshrl.u32 %v2897_v32, 16  ;;  %v490_v42 = vrot.slane %v485_v35, %v3345_v5  ;;  %v493_v43 = vpack.i.b16 %v492_v36, %v492_v36  ;;  %v248_v44 = vshrl.u32 %v2894_v37, 16 }
  0x3f   :  { %v2890_v45 = vcombine.low %v119_v33, %v119_v33  ;;  %653 = vrot.lane.b32.xlu0 %v2916_v34, %s3278_s23  ;;  %v2911_v47 = vcombine.low %v506_v29, %v514_v38  ;;  %v265_v48 = vpack.i.b16 %v264_v39, %v264_v39  ;;  %v256_v51 = vshrl.u32 %v2895_v41, 16  ;;  %v3420_v29 = vld [vmem:[%s4205_s0 + $0x8] sm:$0xff] }
  0x40   :  { %v273_v50 = vpack.i.b16 %v272_v40, %v272_v40  ;;  %v498_v52 = vrot.slane %v493_v43, %v3345_v5  ;;  %v249_v53 = vpack.i.b16 %v248_v44, %v248_v44  ;;  %v2891_v54 = vcombine.high %v119_v33, %v119_v33 }
  0x41   :  { %v145_v55 = vpack.i.b16 %v2890_v45, %v2890_v45  ;;  %527 = vrot.lane.b32.xlu1 %v2911_v47, %s3279_s24  ;;  %v270_v56 = vrot.slane %v265_v48, %v3341_v3  ;;  %v257_v58 = vpack.i.b16 %v256_v51, %v256_v51  ;;  %v2888_v59 = vcombine.low %v118_v46, %v118_v46  ;;  %v716_v45 = vld [vmem:[#allocation2 + $0x2c] sm:$0xf] }
  0x42   :  { %v278_v57 = vrot.slane %v273_v50, %v3341_v3  ;;  %v2910_v62 = vcombine.low %v490_v42, %v498_v52  ;;  %v254_v63 = vrot.slane %v249_v53, %v3341_v3  ;;  %v152_v1 = vpack.i.b16 %v2891_v54, %v2891_v54 }
  0x43   :  { %v150_v0 = vrot.slane %v145_v55, %v3341_v3  ;;  %v262_v6 = vrot.slane %v257_v58, %v3341_v3  ;;  %v2889_v7 = vcombine.high %v118_v46, %v118_v46  ;;  %v131_v8 = vpack.i.b16 %v2888_v59, %v2888_v59  ;;  %v713_v46 = vld [vmem:[#allocation2 + $0x14] sm:$0xf] }
  0x44   :  { %v2899_v2 = vcombine.low %v270_v56, %v278_v57  ;;  %525 = vrot.lane.b32.xlu0 %v2910_v62, %s3279_s24  ;;  %v157_v9 = vrot.slane %v152_v1, %v3341_v3  ;;  %v2932_v10 = vcombine.low %v950_v60, %v950_v60  ;;  %v2933_v11 = vcombine.high %v950_v60, %v950_v60 }
  0x45   :  { %v2930_v12 = vcombine.low %v949_v61, %v949_v61  ;;  %v2898_v15 = vcombine.low %v254_v63, %v262_v6  ;;  %v136_v16 = vrot.slane %v131_v8, %v3341_v3  ;;  %v138_v17 = vpack.i.b16 %v2889_v7, %v2889_v7 }
  0x46   :  { %291 = vrot.lane.b32.xlu1 %v2899_v2, %s3280_s29  ;;  %v2931_v18 = vcombine.high %v949_v61, %v949_v61  ;;  %v2893_v21 = vcombine.low %v150_v0, %v157_v9  ;;  %v976_v22 = vpack.i.b16 %v2932_v10, %v2932_v10  ;;  %v983_v23 = vpack.i.b16 %v2933_v11, %v2933_v11 }
  0x47   :  { %v962_v24 = vpack.i.b16 %v2930_v12, %v2930_v12  ;;  %v143_v26 = vrot.slane %v138_v17, %v3341_v3  ;;  %v3415_v28 = vpack.c.bf16 %v3393_v14, %v3388_v13  ;;  %v3438_v35 = vpack.c.bf16 %v3405_v20, %v3400_v19 }
  0x48   :  { %v969_v27 = vpack.i.b16 %v2931_v18, %v2931_v18  ;;  %289 = vrot.lane.b32.xlu0 %v2898_v15, %s3280_s29  ;;  %v981_v32 = vrot.slane %v976_v22, %v3341_v3  ;;  %v988_v33 = vrot.slane %v983_v23, %v3341_v3  ;;  %v3446_v39 = vpack.c.bf16 %v3420_v29, %v3410_v25 }
  0x49   :  { %v967_v34 = vrot.slane %v962_v24, %v3341_v3  ;;  %v2892_v36 = vcombine.low %v136_v16, %v143_v26  ;;  %111 = vst [vmem:[#allocation2 + $0x24] sm:$0xff] %v3415_v28  ;;  %109 = vst [vmem:[#allocation2 + $0xc] sm:$0xff] %v3438_v35  ;;  %v3450_v40 = vpack.c.bf16 %v3430_v31, %v3425_v30  ;;  %vm176_vm0 = vcmask 1043456   ;;  %v830_v24 = vld [vmem:[#allocation2 + $0x2c] sm:$0xf] }
  0x4a   :  { %170 = vrot.lane.b32.xlu1 %v2893_v21, %s3281_s2  ;;  %v974_v37 = vrot.slane %v969_v27, %v3341_v3  ;;  %v2935_v38 = vcombine.low %v981_v32, %v988_v33  ;;  %108 = vst [vmem:[#allocation2 + $0x4] sm:$0xff] %v3446_v39  ;;  %vm449_vm1 = vcmask 121856   ;;  %vm411_vm2 = vcmask 924672  }
  0x4b   :  { %110 = vst [vmem:[#allocation2 + $0x1c] sm:$0xff] %v3450_v40  ;;  %vm174_vm3 = vcmask 908288   ;;  %vm333_vm4 = vcmask 130048   ;;  %vm569_vm5 = vcmask 7168   ;;  %vm531_vm6 = vcmask 1039360  }
  0x4c   :  { %168 = vrot.lane.b32.xlu0 %v2892_v36, %s3281_s2  ;;  %v2934_v41 = vcombine.low %v967_v34, %v974_v37  ;;  %v598_v37 = vld [vmem:[#allocation2 + $0x2c] sm:$0xf]  ;;  %vm295_vm7 = vcmask 916480   ;;  %vm213_vm8 = vcmask 138240  }
  0x4e   :  { %1001 = vrot.lane.b32.xlu1 %v2935_v38, %s3282_s21 }
  0x50   :  { %999 = vrot.lane.b32.xlu0 %v2934_v41, %s3282_s21  ;;  %v354_v52 = vld [vmem:[#allocation2 + $0x28] sm:$0xf]  ;;  %v351_v53 = vld [vmem:[#allocation2 + $0x10] sm:$0xf] }
  0x51   :  { %v117_v1 = vld [vmem:[#allocation2 + $0x28] sm:$0xf]  ;;  %v114_v2 = vld [vmem:[#allocation2 + $0x10] sm:$0xf]  ;;  %v3489_v26 = vld [vmem:[#allocation2] sm:$0xff] }
  0x52   :  { %v3498_v38 = vld [vmem:[#allocation2 + $0x18] sm:$0xff] }
  0xa2   :  { %v768_v42 = vpop.permute.xlu1 %767 }
  0xa3   :  { %v771_v63 = vrot.slane %v768_v42, 4 }
  0xa4   :  { %v406_v43 = vpop.permute.xlu0 %405 }
  0xa5   :  { %v773_v11 = vsel %vm449_vm1, %v771_v63, %v768_v42  ;;  %v409_v18 = vrot.slane %v406_v43, 4 }
  0xa6   :  { %v770_v44 = vpop.permute.xlu1 %769  ;;  %v779_v16 = vmul.bf16 %v3446_v39, %v773_v11  ;;  %v782_v22 = vmul.bf16 %v3450_v40, %v773_v11 }
  0xa7   :  { %v772_v47 = vrot.slane %v770_v44, 4  ;;  %v412_v23 = vsel %vm411_vm2, %v409_v18, %v406_v43 }
  0xa8   :  { %v3457_v54 = vpop.permute.xlu0 %885  ;;  %v418_v36 = vmul.bf16 %v412_v23, %v3489_v26 }
  0xa9   :  { %v784_v48 = vmul.bf16 %v772_v47, %v716_v45  ;;  %v781_v50 = vmul.bf16 %v772_v47, %v713_v46  ;;  %v774_v6 = vsel %vm176_vm0, %v771_v63, %v772_v47  ;;  %v3507_v47 = vld [vmem:[#allocation2 + $0x8] sm:$0xff] }
  0xaa   :  { %v408_v51 = vpop.permute.xlu1 %407  ;;  %v775_v12 = vsel %vm449_vm1, %v774_v6, %v770_v44  ;;  %v421_v44 = vmul.bf16 %v412_v23, %v3498_v38 }
  0xab   :  { %v410_v55 = vrot.slane %v408_v51, 4  ;;  %801 = vrot.lane.b32.xlu1 %v784_v48, %s3277_s3  ;;  %795 = vrot.lane.b32.xlu0 %v781_v50, %s3277_s3  ;;  %v780_v15 = vmul.bf16 %v3438_v35, %v775_v12  ;;  %v783_v21 = vmul.bf16 %v3415_v28, %v775_v12  ;;  %v467_v12 = vld [vmem:[#allocation2 + $0x10] sm:$0xf] }
  0xad   :  { %v423_v56 = vmul.bf16 %v410_v55, %v354_v52  ;;  %v420_v57 = vmul.bf16 %v410_v55, %v351_v53  ;;  %v3465_v59 = vpop.permute.xlu0 %887  ;;  %v413_v41 = vsel %vm176_vm0, %v409_v18, %v410_v55  ;;  %v3513_v52 = vld [vmem:[#allocation2 + $0x20] sm:$0xff]  ;;  %v234_v18 = vld [vmem:[#allocation2 + $0x28] sm:$0xf] }
  0xae   :  { %v3461_v58 = vpop.permute.xlu1 %655  ;;  %v890_v27 = vrot.slane %v3465_v59, 4  ;;  %v414_v45 = vsel %vm411_vm2, %v413_v41, %v408_v51 }
  0xaf   :  { %440 = vrot.lane.b32.xlu1 %v423_v56, %s3276_s1  ;;  %434 = vrot.lane.b32.xlu0 %v420_v57, %s3276_s1  ;;  %v3495_v32 = vrot.slane %v3461_v58, 4  ;;  %v419_v48 = vmul.bf16 %v414_v45, %v3507_v47  ;;  %v422_v53 = vmul.bf16 %v414_v45, %v3513_v52  ;;  %v470_v56 = vld [vmem:[#allocation2 + $0x28] sm:$0xf]  ;;  %v827_v57 = vld [vmem:[#allocation2 + $0x14] sm:$0xf] }
  0xb0   :  { %v902_v34 = vmul.bf16 %v890_v27, %v830_v24 }
  0xb1   :  { %v3471_v62 = vpop.permute.xlu0 %653  ;;  %v670_v43 = vmul.bf16 %v3495_v32, %v598_v37 }
  0xb3   :  { %v3467_v60 = vpop.permute.xlu1 %527 }
  0xb4   :  { %v530_v51 = vrot.slane %v3467_v60, 4 }
  0xb6   :  { %v3474_v8 = vpop.permute.xlu0 %525 }
  0xb8   :  { %v3469_v61 = vpop.permute.xlu1 %291 }
  0xba   :  { %v3482_v17 = vpop.permute.xlu0 %289 }
  0xbc   :  { %v171_v0 = vpop.permute.xlu1 %170 }
  0xbd   :  { %v173_v7 = vrot.slane %v171_v0, 4 }
  0xbe   :  { %v169_v33 = vpop.permute.xlu0 %168 }
  0xbf   :  { %v187_v9 = vmul.bf16 %v173_v7, %v117_v1  ;;  %v184_v10 = vmul.bf16 %v173_v7, %v114_v2  ;;  %v172_v42 = vrot.slane %v169_v33, 4  ;;  %v543_v1 = vmul.bf16 %v530_v51, %v470_v56 }
  0xc0   :  { %v899_v2 = vmul.bf16 %v890_v27, %v827_v57  ;;  %v1002_v56 = vpop.permute.xlu1 %1001 }
  0xc1   :  { %204 = vrot.lane.b32.xlu1 %v187_v9, %s3282_s21  ;;  %198 = vrot.lane.b32.xlu0 %v184_v10, %s3282_s21  ;;  %v175_v46 = vsel %vm174_vm3, %v172_v42, %v169_v33  ;;  %v177_v63 = vsel %vm176_vm0, %v172_v42, %v173_v7  ;;  %v595_v9 = vld [vmem:[#allocation2 + $0x14] sm:$0xf]  ;;  %v889_v7 = vrot.slane %v3457_v54, 4 }
  0xc2   :  { %v182_v50 = vmul.bf16 %v3489_v26, %v175_v46  ;;  %v185_v55 = vmul.bf16 %v3498_v38, %v175_v46  ;;  %v178_v6 = vsel %vm174_vm3, %v177_v63, %v171_v0  ;;  %v667_v11 = vmul.bf16 %v3495_v32, %v595_v9  ;;  %v1000_v57 = vpop.permute.xlu0 %999 }
  0xc3   :  { %v183_v10 = vmul.bf16 %v3507_v47, %v178_v6  ;;  %v186_v0 = vmul.bf16 %v3513_v52, %v178_v6  ;;  %v891_v33 = vsel %vm333_vm4, %v889_v7, %v3457_v54  ;;  %v1004_v6 = vrot.slane %v1002_v56, 4 }
  0xc4   :  { %v897_v37 = vmul.bf16 %v3446_v39, %v891_v33  ;;  %v900_v41 = vmul.bf16 %v3450_v40, %v891_v33  ;;  %v1003_v9 = vrot.slane %v1000_v57, 4 }
  0xc5   :  { %793 = vrot.lane.b32.xlu1 %v780_v15, %s3277_s3  ;;  %791 = vrot.lane.b32.xlu0 %v779_v16, %s3277_s3  ;;  %v294_v15 = vrot.slane %v3469_v61, 4  ;;  %v540_v16 = vmul.bf16 %v530_v51, %v467_v12 }
  0xc7   :  { %v307_v23 = vmul.bf16 %v294_v15, %v234_v18  ;;  %v945_v18 = vld [vmem:[#allocation2 + $0x14] sm:$0xf] }
  0xc9   :  { %799 = vrot.lane.b32.xlu1 %v783_v21, %s3277_s3  ;;  %797 = vrot.lane.b32.xlu0 %v782_v22, %s3277_s3  ;;  %v231_v21 = vld [vmem:[#allocation2 + $0x10] sm:$0xf]  ;;  %v892_v22 = vsel %vm176_vm0, %v889_v7, %v890_v27  ;;  %v1005_v7 = vsel %vm213_vm8, %v1003_v9, %v1000_v57 }
  0xca   :  { %v304_v24 = vmul.bf16 %v294_v15, %v231_v21 }
  0xcd   :  { %919 = vrot.lane.b32.xlu1 %v902_v34, %s3280_s29  ;;  %430 = vrot.lane.b32.xlu0 %v418_v36, %s3276_s1  ;;  %v893_v34 = vsel %vm333_vm4, %v892_v22, %v3465_v59  ;;  %v657_v36 = vrot.slane %v3471_v62, 4 }
  0xce   :  { %v898_v27 = vmul.bf16 %v3438_v35, %v893_v34  ;;  %v901_v59 = vmul.bf16 %v3415_v28, %v893_v34 }
  0xcf   :  { %v660_v54 = vsel %vm176_vm0, %v657_v36, %v3495_v32  ;;  %v659_v42 = vsel %vm569_vm5, %v657_v36, %v3471_v62 }
  0xd0   :  { %v665_v32 = vmul.bf16 %v3446_v39, %v659_v42 }
  0xd1   :  { %687 = vrot.lane.b32.xlu1 %v670_v43, %s3279_s24  ;;  %436 = vrot.lane.b32.xlu0 %v421_v44, %s3276_s1  ;;  %v661_v43 = vsel %vm569_vm5, %v660_v54, %v3461_v58  ;;  %v529_v44 = vrot.slane %v3474_v8, 4  ;;  %v668_v58 = vmul.bf16 %v3450_v40, %v659_v42 }
  0xd2   :  { %v666_v45 = vmul.bf16 %v3438_v35, %v661_v43  ;;  %v669_v46 = vmul.bf16 %v3415_v28, %v661_v43 }
  0xd3   :  { %v533_v62 = vsel %vm176_vm0, %v529_v44, %v530_v51 }
  0xd5   :  { %432 = vrot.lane.b32.xlu1 %v419_v48, %s3276_s1  ;;  %194 = vrot.lane.b32.xlu0 %v182_v50, %s3282_s21  ;;  %v532_v48 = vsel %vm531_vm6, %v529_v44, %v3474_v8  ;;  %v534_v50 = vsel %vm531_vm6, %v533_v62, %v3467_v60 }
  0xd6   :  { %v538_v51 = vmul.bf16 %v532_v48, %v3489_v26  ;;  %v542_v60 = vmul.bf16 %v534_v50, %v3513_v52  ;;  %v541_v63 = vmul.bf16 %v532_v48, %v3498_v38 }
  0xd9   :  { %438 = vrot.lane.b32.xlu1 %v422_v53, %s3276_s1  ;;  %200 = vrot.lane.b32.xlu0 %v185_v55, %s3282_s21  ;;  %v293_v53 = vrot.slane %v3482_v17, 4  ;;  %v539_v55 = vmul.bf16 %v534_v50, %v3507_v47 }
  0xdb   :  { %v297_v8 = vsel %vm176_vm0, %v293_v53, %v294_v15 }
  0xdd   :  { %560 = vrot.lane.b32.xlu1 %v543_v1, %s3278_s23  ;;  %913 = vrot.lane.b32.xlu0 %v899_v2, %s3280_s29  ;;  %v298_v1 = vsel %vm295_vm7, %v297_v8, %v3469_v61  ;;  %v296_v2 = vsel %vm295_vm7, %v293_v53, %v3482_v17  ;;  %v1006_v61 = vsel %vm176_vm0, %v1003_v9, %v1004_v6 }
  0xde   :  { %v306_v12 = vmul.bf16 %v3513_v52, %v298_v1  ;;  %v305_v17 = vmul.bf16 %v3498_v38, %v296_v2  ;;  %v1007_v15 = vsel %vm213_vm8, %v1006_v61, %v1002_v56  ;;  %v1014_v52 = vmul.bf16 %v3450_v40, %v1005_v7 }
  0xdf   :  { %v1015_v38 = vmul.bf16 %v3415_v28, %v1007_v15 }
  0xe1   :  { %196 = vrot.lane.b32.xlu1 %v183_v10, %s3282_s21  ;;  %681 = vrot.lane.b32.xlu0 %v667_v11, %s3279_s24  ;;  %v303_v10 = vmul.bf16 %v3507_v47, %v298_v1  ;;  %v302_v11 = vmul.bf16 %v3489_v26, %v296_v2  ;;  %v1012_v26 = vmul.bf16 %v3438_v35, %v1007_v15 }
  0xe2   :  { %v1011_v47 = vmul.bf16 %v3446_v39, %v1005_v7  ;;  %v1013_v39 = vmul.bf16 %v1004_v6, %v945_v18 }
  0xe5   :  { %202 = vrot.lane.b32.xlu1 %v186_v0, %s3282_s21  ;;  %554 = vrot.lane.b32.xlu0 %v540_v16, %s3278_s23  ;;  %v3130_v0 = vld [vmem:[#allocation4 + $0x4] ss:$8 sps:$4 sm:$0xff]   ;;  %v948_v16 = vld [vmem:[#allocation2 + $0x2c] sm:$0xf] }
  0xe6   :  { %2974 = vmatprep.mubr.msk.bf16.mxu0 %vm333_vm4, %v3130_v0  ;;  %2975 = vmatprep.mubr.msk.bf16.mxu1 %vm333_vm4, %v3130_v0  ;;  %v1016_v35 = vmul.bf16 %v1004_v6, %v948_v16 }
  0xe9   :  { %324 = vrot.lane.b32.xlu1 %v307_v23, %s3274_s20  ;;  %318 = vrot.lane.b32.xlu0 %v304_v24, %s3274_s20 }
  0xed   :  { %911 = vrot.lane.b32.xlu1 %v898_v27, %s3280_s29  ;;  %909 = vrot.lane.b32.xlu0 %v897_v37, %s3280_s29 }
  0xf1   :  { %917 = vrot.lane.b32.xlu1 %v901_v59, %s3280_s29  ;;  %915 = vrot.lane.b32.xlu0 %v900_v41, %s3280_s29 }
  0xf5   :  { %679 = vrot.lane.b32.xlu1 %v666_v45, %s3279_s24  ;;  %677 = vrot.lane.b32.xlu0 %v665_v32, %s3279_s24 }
  0xf9   :  { %685 = vrot.lane.b32.xlu1 %v669_v46, %s3279_s24  ;;  %683 = vrot.lane.b32.xlu0 %v668_v58, %s3279_s24 }
  0xfd   :  { %552 = vrot.lane.b32.xlu1 %v539_v55, %s3278_s23  ;;  %550 = vrot.lane.b32.xlu0 %v538_v51, %s3278_s23 }
 0x101   :  { %558 = vrot.lane.b32.xlu1 %v542_v60, %s3278_s23  ;;  %556 = vrot.lane.b32.xlu0 %v541_v63, %s3278_s23 }
 0x105   :  { %316 = vrot.lane.b32.xlu1 %v303_v10, %s3274_s20  ;;  %314 = vrot.lane.b32.xlu0 %v302_v11, %s3274_s20 }
 0x109   :  { %322 = vrot.lane.b32.xlu1 %v306_v12, %s3274_s20  ;;  %320 = vrot.lane.b32.xlu0 %v305_v17, %s3274_s20 }
 0x10d   :  { %1025 = vrot.lane.b32.xlu1 %v1012_v26, %s3281_s2  ;;  %1023 = vrot.lane.b32.xlu0 %v1011_v47, %s3281_s2 }
 0x111   :  { %1031 = vrot.lane.b32.xlu1 %v1015_v38, %s3281_s2  ;;  %1029 = vrot.lane.b32.xlu0 %v1014_v52, %s3281_s2 }
 0x115   :  { %1033 = vrot.lane.b32.xlu1 %v1016_v35, %s3281_s2  ;;  %1027 = vrot.lane.b32.xlu0 %v1013_v39, %s3281_s2 }
 0x11d   :  { %v802_v21 = vpop.permute.xlu1 %801  ;;  %v796_v22 = vpop.permute.xlu0 %795 }
 0x11e   :  { %v805_v63 = vrot.slane %v796_v22, 4  ;;  %v808_v6 = vrot.slane %v802_v21, 4 }
 0x121   :  { %v3608_v23 = vpop.permute.xlu1 %440  ;;  %v3610_v24 = vpop.permute.xlu0 %434 }
 0x133   :  { %v3612_v28 = vpop.permute.xlu1 %204  ;;  %v3614_v40 = vpop.permute.xlu0 %198 }
 0x137   :  { %v794_v33 = vpop.permute.xlu1 %793  ;;  %v792_v34 = vpop.permute.xlu0 %791 }
 0x138   :  { %v804_v51 = vrot.slane %v794_v33, 4  ;;  %v803_v9 = vrot.slane %v792_v34, 4 }
 0x13a   :  { %v811_v10 = vsel %vm176_vm0, %v804_v51, %v805_v63  ;;  %v809_v16 = vsel %vm176_vm0, %v803_v9, %v804_v51 }
 0x13b   :  { %v800_v36 = vpop.permute.xlu1 %799  ;;  %v798_v27 = vpop.permute.xlu0 %797  ;;  %v812_v52 = vsel %vm411_vm2, %v794_v33, %v811_v10 }
 0x13c   :  { %v807_v8 = vrot.slane %v800_v36, 4  ;;  %v806_v56 = vrot.slane %v798_v27, 4 }
 0x13e   :  { %v815_v61 = vsel %vm176_vm0, %v807_v8, %v808_v6  ;;  %v813_v12 = vsel %vm176_vm0, %v806_v56, %v807_v8 }
 0x13f   :  { %v920_v37 = vpop.permute.xlu1 %919  ;;  %v3616_v54 = vpop.permute.xlu0 %430  ;;  %v816_v18 = vsel %vm411_vm2, %v800_v36, %v815_v61  ;;  %v814_v35 = vsel %vm411_vm2, %v798_v27, %v813_v12  ;;  %v810_v27 = vsel %vm411_vm2, %v792_v34, %v809_v16  ;;  %v3174_v12 = vpack.c.bf16 %v3430_v31, %v3420_v29 }
 0x140   :  { %v926_v17 = vrot.slane %v920_v37, 4  ;;  %v2963_v10 = vcombine.high %v810_v27, %v814_v35  ;;  %v442_v31 = vrot.slane %v3616_v54, 4 }
 0x143   :  { %v3618_v59 = vpop.permute.xlu1 %687  ;;  %v3620_v41 = vpop.permute.xlu0 %436 }
 0x144   :  { %v694_v34 = vrot.slane %v3618_v59, 4 }
 0x147   :  { %v3622_v42 = vpop.permute.xlu1 %432  ;;  %v3624_v43 = vpop.permute.xlu0 %194 }
 0x14b   :  { %v3626_v44 = vpop.permute.xlu1 %438  ;;  %v3628_v45 = vpop.permute.xlu0 %200 }
 0x14c   :  { %v446_v16 = vrot.slane %v3626_v44, 4 }
 0x14f   :  { %v3630_v32 = vpop.permute.xlu1 %560  ;;  %v914_v62 = vpop.permute.xlu0 %913 }
 0x150   :  { %v923_v11 = vrot.slane %v914_v62, 4 }
 0x153   :  { %v3632_v46 = vpop.permute.xlu1 %196  ;;  %v682_v58 = vpop.permute.xlu0 %681 }
 0x157   :  { %v3634_v48 = vpop.permute.xlu1 %202  ;;  %v3636_v50 = vpop.permute.xlu0 %554 }
 0x15b   :  { %v3638_v53 = vpop.permute.xlu1 %324  ;;  %v3640_v55 = vpop.permute.xlu0 %318 }
 0x15f   :  { %v912_v57 = vpop.permute.xlu1 %911  ;;  %v910_v60 = vpop.permute.xlu0 %909 }
 0x160   :  { %v922_v1 = vrot.slane %v912_v57, 4  ;;  %v921_v2 = vrot.slane %v910_v60, 4 }
 0x162   :  { %v927_v0 = vsel %vm176_vm0, %v921_v2, %v922_v1  ;;  %v929_v38 = vsel %vm176_vm0, %v922_v1, %v923_v11  ;;  %v691_v2 = vrot.slane %v682_v58, 4  ;;  %v2965_v11 = vcombine.high %v812_v52, %v816_v18 }
 0x163   :  { %v918_v7 = vpop.permute.xlu1 %917  ;;  %v916_v15 = vpop.permute.xlu0 %915  ;;  %v928_v62 = vsel %vm295_vm7, %v910_v60, %v927_v0  ;;  %v930_v56 = vsel %vm295_vm7, %v912_v57, %v929_v38  ;;  %v2962_v0 = vcombine.low %v810_v27, %v814_v35  ;;  %v2964_v38 = vcombine.low %v812_v52, %v816_v18 }
 0x164   :  { %v925_v26 = vrot.slane %v918_v7, 4  ;;  %v924_v47 = vrot.slane %v916_v15, 4  ;;  %v444_v27 = vrot.slane %v3610_v24, 4 }
 0x166   :  { %v931_v39 = vsel %vm176_vm0, %v924_v47, %v925_v26  ;;  %v933_v21 = vsel %vm176_vm0, %v925_v26, %v926_v17  ;;  %v3175_v17 = vpack.c.bf16 %v3393_v14, %v3405_v20  ;;  %v447_v26 = vrot.slane %v3608_v23, 4 }
 0x167   :  { %v680_v22 = vpop.permute.xlu1 %679  ;;  %v678_v37 = vpop.permute.xlu0 %677  ;;  %v932_v8 = vsel %vm295_vm7, %v916_v15, %v931_v39  ;;  %v934_v33 = vsel %vm295_vm7, %v918_v7, %v933_v21  ;;  %v443_v47 = vrot.slane %v3622_v42, 4 }
 0x168   :  { %v690_v63 = vrot.slane %v680_v22, 4  ;;  %v689_v51 = vrot.slane %v678_v37, 4  ;;  %v2967_v1 = vcombine.high %v928_v62, %v932_v8  ;;  %v2969_v36 = vcombine.high %v930_v56, %v934_v33 }
 0x169   :  { %v2966_v6 = vcombine.low %v928_v62, %v932_v8  ;;  %v2968_v9 = vcombine.low %v930_v56, %v934_v33  ;;  %v445_v8 = vrot.slane %v3620_v41, 4  ;;  %v451_v24 = vsel %vm176_vm0, %v443_v47, %v444_v27 }
 0x16a   :  { %1288 = vmatprep.subr.bf16.mxu0 %v2967_v1  ;;  %1331 = vmatprep.subr.bf16.mxu1 %v2969_v36  ;;  %v697_v60 = vsel %vm176_vm0, %v690_v63, %v691_v2  ;;  %v695_v58 = vsel %vm176_vm0, %v689_v51, %v690_v63  ;;  %v3176_v63 = vpack.c.bf16 %v3425_v30, %v3410_v25  ;;  %v564_v51 = vrot.slane %v3636_v50, 4 }
 0x16b   :  { %v686_v61 = vpop.permute.xlu1 %685  ;;  %1289 = vmatpush1.bf16.msra.mxu0 %v2966_v6  ;;  %1332 = vmatpush1.bf16.msra.mxu1 %v2968_v9  ;;  %v684_v57 = vpop.permute.xlu0 %683  ;;  %v698_v29 = vsel %vm531_vm6, %v680_v22, %v697_v60  ;;  %v696_v59 = vsel %vm531_vm6, %v678_v37, %v695_v58  ;;  %v455_v37 = vsel %vm176_vm0, %v446_v16, %v447_v26  ;;  %v211_v2 = vrot.slane %v3612_v28, 4 }
 0x16c   :  { %v693_v7 = vrot.slane %v686_v61, 4  ;;  %v692_v15 = vrot.slane %v684_v57, 4  ;;  %1290 = vmatprep.subr.bf16.mxu0 %v2963_v10  ;;  %1333 = vmatprep.subr.bf16.mxu1 %v2965_v11  ;;  %v3177_v1 = vpack.c.bf16 %v3388_v13, %v3400_v19  ;;  %v448_v36 = vsel %vm176_vm0, %v442_v31, %v443_v47 }
 0x16d   :  { %v567_v6 = vrot.slane %v3630_v32, 4  ;;  %v453_v30 = vsel %vm176_vm0, %v445_v8, %v446_v16  ;;  %v208_v19 = vrot.slane %v3614_v40, 4  ;;  %v456_v28 = vsel %vm449_vm1, %v3626_v44, %v455_v37 }
 0x16e   :  { %v701_v14 = vsel %vm176_vm0, %v693_v7, %v694_v34  ;;  %v699_v20 = vsel %vm176_vm0, %v692_v15, %v693_v7  ;;  %v450_v32 = vsel %vm449_vm1, %v3616_v54, %v448_v36  ;;  %v210_v60 = vrot.slane %v3634_v48, 4 }
 0x16f   :  { %v702_v39 = vsel %vm531_vm6, %v686_v61, %v701_v14  ;;  %v700_v23 = vsel %vm531_vm6, %v684_v57, %v699_v20  ;;  %v553_v21 = vpop.permute.xlu1 %552  ;;  %1291 = vmatpush1.bf16.msra.mxu0 %v2962_v0  ;;  %1334 = vmatpush1.bf16.msra.mxu1 %v2964_v38  ;;  %v551_v52 = vpop.permute.xlu0 %550  ;;  %v209_v0 = vrot.slane %v3628_v45, 4  ;;  %v206_v14 = vrot.slane %v3624_v43, 4 }
 0x170   :  { %v2958_v18 = vcombine.low %v696_v59, %v700_v23  ;;  %v2959_v35 = vcombine.high %v696_v59, %v700_v23  ;;  %v563_v62 = vrot.slane %v553_v21, 4  ;;  %v562_v22 = vrot.slane %v551_v52, 4 }
 0x171   :  { %v2961_v56 = vcombine.high %v698_v29, %v702_v39  ;;  %v2960_v33 = vcombine.low %v698_v29, %v702_v39  ;;  %v452_v29 = vsel %vm449_vm1, %v3622_v42, %v451_v24  ;;  %v328_v20 = vrot.slane %v3640_v55, 4 }
 0x172   :  { %1292 = vmatprep.subr.bf16.mxu0 %v2959_v35  ;;  %v571_v50 = vsel %vm176_vm0, %v563_v62, %v564_v51  ;;  %v568_v10 = vsel %vm176_vm0, %v562_v22, %v563_v62  ;;  %v219_v59 = vsel %vm176_vm0, %v210_v60, %v211_v2  ;;  %v331_v39 = vrot.slane %v3638_v53, 4 }
 0x173   :  { %1335 = vmatprep.subr.bf16.mxu1 %v2961_v56  ;;  %v559_v9 = vpop.permute.xlu1 %558  ;;  %1293 = vmatpush1.bf16.msra.mxu0 %v2958_v18  ;;  %v557_v25 = vpop.permute.xlu0 %556  ;;  %v572_v40 = vsel %vm569_vm5, %v553_v21, %v571_v50  ;;  %v570_v34 = vsel %vm569_vm5, %v551_v52, %v568_v10  ;;  %v2949_v52 = vcombine.high %v452_v29, %v456_v28 }
 0x174   :  { %v566_v11 = vrot.slane %v559_v9, 4  ;;  %1336 = vmatpush1.bf16.msra.mxu1 %v2960_v33  ;;  %v565_v13 = vrot.slane %v557_v25, 4  ;;  %1294 = vmatprep.subr.bf16.mxu0 %v3174_v12  ;;  %v454_v12 = vsel %vm449_vm1, %v3620_v41, %v453_v30  ;;  %v207_v41 = vrot.slane %v3632_v46, 4 }
 0x175   :  { %1337 = vmatprep.subr.bf16.mxu1 %v3175_v17  ;;  %v2947_v31 = vcombine.high %v450_v32, %v454_v12  ;;  %v217_v18 = vsel %vm176_vm0, %v209_v0, %v210_v60  ;;  %v2946_v8 = vcombine.low %v450_v32, %v454_v12  ;;  %v2948_v56 = vcombine.low %v452_v29, %v456_v28  ;;  %v3128_v0 = vld [vmem:[#allocation4] ss:$8 sps:$4 sm:$0xff]  }
 0x176   :  { %v575_v61 = vsel %vm176_vm0, %v566_v11, %v567_v6  ;;  %v573_v57 = vsel %vm176_vm0, %v565_v13, %v566_v11  ;;  %v215_v22 = vsel %vm176_vm0, %v207_v41, %v208_v19  ;;  %v212_v53 = vsel %vm176_vm0, %v206_v14, %v207_v41 }
 0x177   :  { %v576_v58 = vsel %vm569_vm5, %v559_v9, %v575_v61  ;;  %v574_v44 = vsel %vm569_vm5, %v557_v25, %v573_v57  ;;  %v317_v17 = vpop.permute.xlu1 %316  ;;  %1295 = vmatpush1.bf16.msra.mxu0 %v3176_v63  ;;  %v315_v54 = vpop.permute.xlu0 %314  ;;  %v220_v33 = vsel %vm213_vm8, %v3634_v48, %v219_v59  ;;  %v218_v51 = vsel %vm213_vm8, %v3628_v45, %v217_v18 }
 0x178   :  { %v2952_v7 = vcombine.low %v572_v40, %v576_v58  ;;  %v2953_v15 = vcombine.high %v572_v40, %v576_v58  ;;  %v2950_v26 = vcombine.low %v570_v34, %v574_v44  ;;  %v2951_v47 = vcombine.high %v570_v34, %v574_v44  ;;  %1338 = vmatpush1.bf16.msra.mxu1 %v3177_v1 }
 0x179   :  { %v327_v38 = vrot.slane %v317_v17, 4  ;;  %v326_v16 = vrot.slane %v315_v54, 4  ;;  %v214_v45 = vsel %vm213_vm8, %v3624_v43, %v212_v53  ;;  %v216_v13 = vsel %vm213_vm8, %v3632_v46, %v215_v22 }
 0x17a   :  { %1296 = vmatprep.subr.bf16.mxu0 %v2951_v47  ;;  %1339 = vmatprep.subr.bf16.mxu1 %v2953_v15  ;;  %v2939_v19 = vcombine.high %v214_v45, %v218_v51  ;;  %v2941_v32 = vcombine.high %v216_v13, %v220_v33  ;;  %v2938_v12 = vcombine.low %v214_v45, %v218_v51 }
 0x17b   :  { %v323_v23 = vpop.permute.xlu1 %322  ;;  %1297 = vmatpush1.bf16.msra.mxu0 %v2950_v26  ;;  %v321_v21 = vpop.permute.xlu0 %320  ;;  %v335_v35 = vsel %vm176_vm0, %v327_v38, %v328_v20  ;;  %v332_v42 = vsel %vm176_vm0, %v326_v16, %v327_v38  ;;  %v2940_v40 = vcombine.low %v216_v13, %v220_v33 }
 0x17c   :  { %v330_v62 = vrot.slane %v323_v23, 4  ;;  %1340 = vmatpush1.bf16.msra.mxu1 %v2952_v7  ;;  %v329_v55 = vrot.slane %v321_v21, 4  ;;  %1298 = vmatprep.subr.bf16.mxu0 %v2947_v31  ;;  %v336_v1 = vsel %vm333_vm4, %v317_v17, %v335_v35  ;;  %v334_v36 = vsel %vm333_vm4, %v315_v54, %v332_v42 }
 0x17d   :  { %1341 = vmatprep.subr.bf16.mxu1 %v2949_v52 }
 0x17e   :  { %v339_v63 = vsel %vm176_vm0, %v330_v62, %v331_v39  ;;  %v337_v37 = vsel %vm176_vm0, %v329_v55, %v330_v62 }
 0x17f   :  { %v340_v27 = vsel %vm333_vm4, %v323_v23, %v339_v63  ;;  %v338_v2 = vsel %vm333_vm4, %v321_v21, %v337_v37  ;;  %v1026_v6 = vpop.permute.xlu1 %1025  ;;  %1299 = vmatpush1.bf16.msra.mxu0 %v2946_v8  ;;  %v1024_v9 = vpop.permute.xlu0 %1023 }
 0x180   :  { %v2944_v25 = vcombine.low %v336_v1, %v340_v27  ;;  %v2945_v48 = vcombine.high %v336_v1, %v340_v27  ;;  %v2942_v30 = vcombine.low %v334_v36, %v338_v2  ;;  %v2943_v50 = vcombine.high %v334_v36, %v338_v2  ;;  %1342 = vmatpush1.bf16.msra.mxu1 %v2948_v56 }
 0x181   :  { %v1036_v10 = vrot.slane %v1026_v6, 4  ;;  %v1035_v11 = vrot.slane %v1024_v9, 4 }
 0x182   :  { %1300 = vmatprep.subr.bf16.mxu0 %v2943_v50  ;;  %1343 = vmatprep.subr.bf16.mxu1 %v2945_v48 }
 0x183   :  { %v1032_v24 = vpop.permute.xlu1 %1031  ;;  %1301 = vmatpush1.bf16.msra.mxu0 %v2942_v30  ;;  %v1030_v28 = vpop.permute.xlu0 %1029  ;;  %v1041_v60 = vsel %vm176_vm0, %v1035_v11, %v1036_v10 }
 0x184   :  { %v1039_v61 = vrot.slane %v1032_v24, 4  ;;  %1344 = vmatpush1.bf16.msra.mxu1 %v2944_v25  ;;  %v1038_v57 = vrot.slane %v1030_v28, 4  ;;  %1302 = vmatprep.subr.bf16.mxu0 %v2939_v19  ;;  %v1042_v46 = vsel %vm174_vm3, %v1024_v9, %v1041_v60 }
 0x185   :  { %1345 = vmatprep.subr.bf16.mxu1 %v2941_v32 }
 0x186   :  { %v1045_v43 = vsel %vm176_vm0, %v1038_v57, %v1039_v61 }
 0x187   :  { %v1046_v34 = vsel %vm174_vm3, %v1030_v28, %v1045_v43  ;;  %v1034_v58 = vpop.permute.xlu1 %1033  ;;  %1303 = vmatpush1.bf16.msra.mxu0 %v2938_v12  ;;  %v1028_v44 = vpop.permute.xlu0 %1027 }
 0x188   :  { %v2970_v17 = vcombine.low %v1042_v46, %v1046_v34  ;;  %v2971_v54 = vcombine.high %v1042_v46, %v1046_v34  ;;  %v1040_v7 = vrot.slane %v1034_v58, 4  ;;  %1346 = vmatpush1.bf16.msra.mxu1 %v2940_v40  ;;  %v1037_v15 = vrot.slane %v1028_v44, 4  ;;  %v1848_v46 = vld [vmem:[#allocation9] sm:$0x22]  ;;  %v2206_v34 = vld [vmem:[#allocation9] sm:$0x88] }
 0x189   :  { %v2998_v44 = vcombine.low %v1848_v46, %v1848_v46 }
 0x18a   :  { %v1047_v26 = vsel %vm176_vm0, %v1039_v61, %v1040_v7  ;;  %v1043_v47 = vsel %vm176_vm0, %v1036_v10, %v1037_v15  ;;  %1318 = vmatprep.subr.bf16.mxu0 %v2971_v54  ;;  %v3016_v54 = vcombine.low %v2206_v34, %v2206_v34  ;;  %v3017_v7 = vcombine.high %v2206_v34, %v2206_v34  ;;  %v1734_v15 = vld [vmem:[#allocation9] sm:$0x22]  ;;  %v1974_v34 = vld [vmem:[#allocation9] sm:$0x44] }
 0x18b   :  { %1319 = vmatpush2.bf16.msra.mxu0 %v2970_v17  ;;  %v1044_v41 = vsel %vm174_vm3, %v1026_v6, %v1043_v47  ;;  %v1048_v38 = vsel %vm174_vm3, %v1032_v24, %v1047_v26  ;;  %v2999_v17 = vcombine.high %v1848_v46, %v1848_v46  ;;  %v1861_v26 = vshrl.u32 %v2998_v44, 16 }
 0x18c   :  { %v2973_v16 = vcombine.high %v1044_v41, %v1048_v38  ;;  %v2972_v29 = vcombine.low %v1044_v41, %v1048_v38  ;;  %v2219_v41 = vshrl.u32 %v3016_v54, 16  ;;  %v2227_v38 = vshrl.u32 %v3017_v7, 16  ;;  %v2324_v54 = vld [vmem:[#allocation9 + $0x10] sm:$0x11]  ;;  %v1377_v7 = vld [vmem:[%s4210_s5 + $0x8] sm:$0xff] }
 0x18d   :  { %v1869_v47 = vshrl.u32 %v2999_v17, 16 }
 0x18e   :  { %1321 = vmatmul.mubr.bf16.vlgmr.msra.gmra.mxu0 %v3128_v0  ;;  %1361 = vmatprep.subr.bf16.mxu1 %v2973_v16  ;;  %v2992_v16 = vcombine.low %v1734_v15, %v1734_v15 }
 0x18f   :  { %1362 = vmatpush2.bf16.msra.mxu1 %v2972_v29  ;;  %v2993_v29 = vcombine.high %v1734_v15, %v1734_v15 }
 0x192   :  { %1364 = vmatmul.mubr.bf16.vlgmr.msra.gmra.mxu1 %v3128_v0  ;;  %v2207_v0 = vld [vmem:[#allocation9 + $0x8] sm:$0x88] }
 0x24e   :  { %v1322_v14 = vpop.f32.mrf.mxu0 }
 0x250   :  { %v1324_v20 = vpop.f32.mrf.mxu0 }
 0x251   :  { %v1378_v31 = vadd.f32 %v1324_v20, %v1322_v14 }
 0x252   :  { %v1326_v59 = vpop.f32.mrf.mxu0  ;;  %v1365_v39 = vpop.f32.mrf.mxu1 }
 0x253   :  { %v1379_v23 = vadd.f32 %v1378_v31, %v1365_v39  ;;  %v1374_v31 = vld [vmem:[%s4209_s4] sm:$0xff] }
 0x254   :  { %v1328_v21 = vpop.f32.mrf.mxu0  ;;  %v1367_v52 = vpop.f32.mrf.mxu1 }
 0x255   :  { %v1383_v18 = vadd.f32 %v1328_v21, %v1326_v59  ;;  %v1380_v35 = vadd.f32 %v1379_v23, %v1367_v52  ;;  %v3019_v23 = vcombine.high %v2207_v0, %v2207_v0 }
 0x256   :  { %v1369_v42 = vpop.f32.mrf.mxu1 }
 0x257   :  { %v1384_v62 = vadd.f32 %v1383_v18, %v1369_v42  ;;  %1381 = vadd.xlane.f32.xlu0 %v1380_v35 }
 0x258   :  { %v1371_v55 = vpop.f32.mrf.mxu1 }
 0x259   :  { %v1385_v22 = vadd.f32 %v1384_v62, %v1371_v55  ;;  %v1747_v62 = vpack.i.b16 %v2992_v16, %v2992_v16  ;;  %v3004_v16 = vcombine.low %v1974_v34, %v1974_v34 }
 0x25b   :  { %1386 = vadd.xlane.f32.xlu1 %v1385_v22 }
 0x2e0   :  { %v1382_v8 = vpop.xlane.xlu0 %1381 }
 0x2e1   :  { %v1388_v56 = vmul.f32 0.001953125, %v1382_v8 }
 0x2e3   :  { %v3739_v53 = vsub.f32 %v1322_v14, %v1388_v56  ;;  %v3741_v33 = vsub.f32 %v1324_v20, %v1388_v56  ;;  %v3743_v63 = vsub.f32 %v1365_v39, %v1388_v56  ;;  %v3745_v51 = vsub.f32 %v1367_v52, %v1388_v56  ;;  %v1616_v14 = vld [vmem:[#allocation9] sm:$0x11]  ;;  %v2092_v56 = vld [vmem:[#allocation9] sm:$0x88] }
 0x2e4   :  { %v1387_v37 = vpop.xlane.xlu1 %1386  ;;  %v3018_v20 = vcombine.low %v2207_v0, %v2207_v0  ;;  %v1870_v39 = vpack.i.b16 %v1869_v47, %v1869_v47  ;;  %v2228_v52 = vpack.i.b16 %v2227_v38, %v2227_v38  ;;  %v2986_v18 = vcombine.low %v1616_v14, %v1616_v14 }
 0x2e5   :  { %v1389_v1 = vmul.f32 0.001953125, %v1387_v37  ;;  %v1398_v36 = vmul.f32 %v3739_v53, %v3739_v53  ;;  %v1399_v27 = vmul.f32 %v3741_v33, %v3741_v33  ;;  %v1400_v2 = vmul.f32 %v3743_v63, %v3743_v63  ;;  %v1375_v37 = vld [vmem:[%s4209_s4 + $0x8] sm:$0xff] }
 0x2e6   :  { %v1401_v30 = vmul.f32 %v3745_v51, %v3745_v51  ;;  %v2987_v35 = vcombine.high %v1616_v14, %v1616_v14  ;;  %v2235_v8 = vshrl.u32 %v3018_v20, 16 }
 0x2e7   :  { %v3753_v6 = vsub.f32 %v1326_v59, %v1389_v1  ;;  %v3755_v9 = vsub.f32 %v1328_v21, %v1389_v1  ;;  %v1406_v25 = vadd.f32 %v1399_v27, %v1398_v36  ;;  %v3757_v48 = vsub.f32 %v1369_v42, %v1389_v1 }
 0x2e8   :  { %v3761_v10 = vsub.f32 %v1371_v55, %v1389_v1  ;;  %v1862_v59 = vpack.i.b16 %v1861_v26, %v1861_v26  ;;  %v2220_v21 = vpack.i.b16 %v2219_v41, %v2219_v41  ;;  %v1754_v55 = vpack.i.b16 %v2993_v29, %v2993_v29 }
 0x2e9   :  { %v1407_v50 = vadd.f32 %v1406_v25, %v1400_v2  ;;  %v1402_v11 = vmul.f32 %v3753_v6, %v3753_v6  ;;  %v1403_v45 = vmul.f32 %v3755_v9, %v3755_v9  ;;  %v1404_v19 = vmul.f32 %v3757_v48, %v3757_v48  ;;  %v1502_v2 = vld [vmem:[#allocation9] sm:$0x11] }
 0x2ea   :  { %v1405_v28 = vmul.f32 %v3761_v10, %v3761_v10  ;;  %v1867_v1 = vrot.slane %v1862_v59, %v3345_v5  ;;  %v1875_v36 = vrot.slane %v1870_v39, %v3345_v5  ;;  %v2243_v27 = vshrl.u32 %v3019_v23, 16  ;;  %v1975_v39 = vld [vmem:[#allocation9 + $0x8] sm:$0x44] }
 0x2eb   :  { %v1408_v13 = vadd.f32 %v1407_v50, %v1401_v30  ;;  %v1411_v24 = vadd.f32 %v1403_v45, %v1402_v11  ;;  %v2225_v25 = vrot.slane %v2220_v21, %v3343_v4  ;;  %v2233_v30 = vrot.slane %v2228_v52, %v3343_v4 }
 0x2ec   :  { %v1629_v50 = vshrl.u32 %v2986_v18, 16  ;;  %v1637_v11 = vshrl.u32 %v2987_v35, 16  ;;  %v2981_v46 = vcombine.high %v1502_v2, %v1502_v2  ;;  %v3005_v29 = vcombine.high %v1974_v34, %v1974_v34 }
 0x2ed   :  { %1409 = vadd.xlane.f32.xlu0 %v1408_v13  ;;  %v1412_v32 = vadd.f32 %v1411_v24, %v1404_v19  ;;  %v1376_v13 = vld [vmem:[%s4210_s5] sm:$0xff]  ;;  %v1752_v19 = vrot.slane %v1747_v62, %v3345_v5  ;;  %v1759_v24 = vrot.slane %v1754_v55, %v3345_v5  ;;  %v3022_v59 = vcombine.low %v2324_v54, %v2324_v54 }
 0x2ee   :  { %v1630_v44 = vpack.i.b16 %v1629_v50, %v1629_v50  ;;  %v1638_v17 = vpack.i.b16 %v1637_v11, %v1637_v11  ;;  %v1522_v20 = vpack.i.b16 %v2981_v46, %v2981_v46  ;;  %v3023_v52 = vcombine.high %v2324_v54, %v2324_v54  ;;  %v1849_v50 = vld [vmem:[#allocation9 + $0x8] sm:$0x22] }
 0x2ef   :  { %v1413_v60 = vadd.f32 %v1412_v32, %v1405_v28  ;;  %v3010_v28 = vcombine.low %v2092_v56, %v2092_v56  ;;  %v3011_v32 = vcombine.high %v2092_v56, %v2092_v56  ;;  %v2996_v15 = vcombine.low %v1752_v19, %v1759_v24  ;;  %v1735_v54 = vld [vmem:[#allocation9 + $0x8] sm:$0x22] }
 0x2f0   :  { %v1635_v23 = vrot.slane %v1630_v44, %v3341_v3  ;;  %v1643_v21 = vrot.slane %v1638_v17, %v3341_v3  ;;  %v1987_v55 = vshrl.u32 %v3004_v16, 16  ;;  %v1527_v56 = vrot.slane %v1522_v20, %v3341_v3 }
 0x2f1   :  { %1414 = vadd.xlane.f32.xlu0 %v1413_v60  ;;  %v2105_v26 = vpack.i.b16 %v3010_v28, %v3010_v28  ;;  %v2112_v47 = vpack.i.b16 %v3011_v32, %v3011_v32 }
 0x2f3   :  { %v2110_v18 = vrot.slane %v2105_v26, %v3343_v4  ;;  %v2117_v35 = vrot.slane %v2112_v47, %v3343_v4 }
 0x376   :  { %v1410_v61 = vpop.xlane.xlu0 %1409 }
 0x377   :  { %v1416_v57 = vmul.f32 0.001953125, %v1410_v61  ;;  %v2236_v61 = vpack.i.b16 %v2235_v8, %v2235_v8  ;;  %v3006_v8 = vcombine.low %v1975_v39, %v1975_v39 }
 0x379   :  { %v1418_v12 = vadd.f32 1e-05, %v1416_v57  ;;  %v2980_v57 = vcombine.low %v1502_v2, %v1502_v2  ;;  %v2241_v41 = vrot.slane %v2236_v61, %v3343_v4  ;;  %v2990_v2 = vcombine.low %v1635_v23, %v1643_v21 }
 0x37a   :  { %v1415_v43 = vpop.xlane.xlu0 %1414  ;;  %v2003_v19 = vshrl.u32 %v3006_v8, 16 }
 0x37b   :  { %3166 = vrsqrt.f32 %v1418_v12  ;;  %v1417_v40 = vmul.f32 0.001953125, %v1415_v43  ;;  %v2093_v12 = vld [vmem:[#allocation9 + $0x8] sm:$0x88]  ;;  %v3002_v43 = vcombine.low %v1867_v1, %v1875_v36  ;;  %v1515_v38 = vpack.i.b16 %v2980_v57, %v2980_v57 }
 0x37c   :  { %v3012_v0 = vcombine.low %v2093_v12, %v2093_v12  ;;  %v2337_v1 = vpack.i.b16 %v3022_v59, %v3022_v59  ;;  %v3007_v36 = vcombine.high %v1975_v39, %v1975_v39  ;;  %v3000_v57 = vcombine.low %v1849_v50, %v1849_v50 }
 0x37d   :  { %v1419_v58 = vadd.f32 1e-05, %v1417_v40  ;;  %v2244_v40 = vpack.i.b16 %v2243_v27, %v2243_v27  ;;  %v1520_v62 = vrot.slane %v1515_v38, %v3341_v3  ;;  %v2004_v46 = vpack.i.b16 %v2003_v19, %v2003_v19 }
 0x37e   :  { %v2342_v32 = vrot.slane %v2337_v1, %v3341_v3  ;;  %v1877_v44 = vshrl.u32 %v3000_v57, 16 }
 0x37f   :  { %3168 = vrsqrt.f32 %v1419_v58  ;;  %v3020_v58 = vcombine.low %v2225_v25, %v2233_v30  ;;  %v2249_v14 = vrot.slane %v2244_v40, %v3343_v4  ;;  %v2344_v25 = vpack.i.b16 %v3023_v52, %v3023_v52  ;;  %v1503_v52 = vld [vmem:[#allocation9 + $0x8] sm:$0x11] }
 0x380   :  { %v3014_v30 = vcombine.low %v2110_v18, %v2117_v35  ;;  %v2984_v24 = vcombine.low %v1520_v62, %v1527_v56  ;;  %v2009_v26 = vrot.slane %v2004_v46, %v3357_v49  ;;  %v1878_v16 = vpack.i.b16 %v1877_v44, %v1877_v44  ;;  %v2325_v56 = vld [vmem:[#allocation9 + $0x18] sm:$0x11] }
 0x381   :  { %v3021_v27 = vcombine.low %v2241_v41, %v2249_v14  ;;  %v2349_v61 = vrot.slane %v2344_v25, %v3341_v3  ;;  %v2995_v41 = vcombine.high %v1735_v54, %v1735_v54  ;;  %v2982_v62 = vcombine.low %v1503_v52, %v1503_v52 }
 0x382   :  { %v1883_v23 = vrot.slane %v1878_v16, %v3345_v5  ;;  %v2983_v8 = vcombine.high %v1503_v52, %v1503_v52  ;;  %v3024_v25 = vcombine.low %v2325_v56, %v2325_v56 }
 0x388   :  { %v3167_v42 = vpop.eup %3166 }
 0x389   :  { %v1422_v22 = vmul.f32 %v3167_v42, %v1374_v31  ;;  %v3013_v31 = vcombine.high %v2093_v12, %v2093_v12  ;;  %v2119_v42 = vpack.i.b16 %v3012_v0, %v3012_v0  ;;  %v3001_v12 = vcombine.high %v1849_v50, %v1849_v50 }
 0x38a   :  { %v2994_v0 = vcombine.low %v1735_v54, %v1735_v54 }
 0x38b   :  { %1426 = vperm.xlu1 %3094, %v1422_v22   ;;  %v1995_v22 = vshrl.u32 %v3005_v29, 16  ;;  %v2124_v11 = vrot.slane %v2119_v42, %v3343_v4  ;;  %v1885_v17 = vshrl.u32 %v3001_v12, 16 }
 0x38c   :  { %v3169_v45 = vpop.eup %3168  ;;  %v1761_v20 = vpack.i.b16 %v2994_v0, %v2994_v0 }
 0x38d   :  { %v1423_v60 = vmul.f32 %v3169_v45, %v1375_v37  ;;  %v2126_v37 = vpack.i.b16 %v3013_v31, %v3013_v31  ;;  %v1988_v45 = vpack.i.b16 %v1987_v55, %v1987_v55  ;;  %v1886_v29 = vpack.i.b16 %v1885_v17, %v1885_v17 }
 0x38e   :  { %v1768_v31 = vpack.i.b16 %v2995_v41, %v2995_v41  ;;  %v1766_v18 = vrot.slane %v1761_v20, %v3345_v5 }
 0x38f   :  { %1444 = vperm.xlu1 %3094, %v1376_v13   ;;  %1431 = vperm.xlu0 %3095, %v1423_v60   ;;  %v1996_v13 = vpack.i.b16 %v1995_v22, %v1995_v22  ;;  %v2131_v28 = vrot.slane %v2126_v37, %v3343_v4  ;;  %v2011_v60 = vshrl.u32 %v3007_v36, 16  ;;  %v1529_v36 = vpack.i.b16 %v2982_v62, %v2982_v62 }
 0x390   :  { %v1773_v35 = vrot.slane %v1768_v31, %v3345_v5 }
 0x391   :  { %v2001_v40 = vrot.slane %v1996_v13, %v3357_v49  ;;  %v2012_v34 = vpack.i.b16 %v2011_v60, %v2011_v60  ;;  %v3015_v4 = vcombine.low %v2124_v11, %v2131_v28 }
 0x392   :  { %v2997_v37 = vcombine.low %v1766_v18, %v1773_v35 }
 0x393   :  { %1449 = vperm.xlu1 %3094, %v1377_v7   ;;  %1902 = vrot.lane.b32.xlu0 %v3002_v43, %s3279_s24  ;;  %v1993_v43 = vrot.slane %v1988_v45, %v3357_v49  ;;  %v1617_v7 = vld [vmem:[#allocation9 + $0x8] sm:$0x11]  ;;  %v2017_v47 = vrot.slane %v2012_v34, %v3357_v49  ;;  %v1891_v49 = vrot.slane %v1886_v29, %v3345_v5 }
 0x394   :  { %v2988_v38 = vcombine.low %v1617_v7, %v1617_v7  ;;  %v2989_v14 = vcombine.high %v1617_v7, %v1617_v7  ;;  %v1534_v5 = vrot.slane %v1529_v36, %v3341_v3  ;;  %v2351_v45 = vpack.i.b16 %v3024_v25, %v3024_v25 }
 0x395   :  { %v3009_v39 = vcombine.low %v2009_v26, %v2017_v47  ;;  %v3003_v55 = vcombine.low %v1883_v23, %v1891_v49  ;;  %v2205_v23 = vld [vmem:[#allocation2 + $0x2c] sm:$0xf]  ;;  %v2202_v49 = vld [vmem:[#allocation2 + $0x14] sm:$0xf] }
 0x396   :  { %v1645_v59 = vshrl.u32 %v2988_v38, 16  ;;  %v1653_v21 = vshrl.u32 %v2989_v14, 16 }
 0x397   :  { %2260 = vrot.lane.b32.xlu1 %v3020_v58, %s3274_s20  ;;  %1784 = vrot.lane.b32.xlu0 %v2996_v15, %s3277_s3  ;;  %v3026_v58 = vcombine.low %v2342_v32, %v2349_v61  ;;  %v3008_v15 = vcombine.low %v1993_v43, %v2001_v40 }
 0x398   :  { %v1646_v42 = vpack.i.b16 %v1645_v59, %v1645_v59  ;;  %v1654_v22 = vpack.i.b16 %v1653_v21, %v1653_v21 }
 0x39a   :  { %v1651_v1 = vrot.slane %v1646_v42, %v3341_v3 }
 0x39b   :  { %2262 = vrot.lane.b32.xlu1 %v3021_v27, %s3274_s20  ;;  %1670 = vrot.lane.b32.xlu0 %v2990_v2, %s3280_s29  ;;  %v1659_v27 = vrot.slane %v1654_v22, %v3341_v3  ;;  %v1536_v2 = vpack.i.b16 %v2983_v8, %v2983_v8  ;;  %v2091_v22 = vld [vmem:[#allocation2 + $0x2c] sm:$0xf]  ;;  %v2088_v8 = vld [vmem:[#allocation2 + $0x14] sm:$0xf] }
 0x39d   :  { %v2991_v50 = vcombine.low %v1651_v1, %v1659_v27  ;;  %v1541_v11 = vrot.slane %v1536_v2, %v3341_v3  ;;  %v1973_v2 = vld [vmem:[#allocation2 + $0x2c] sm:$0xf] }
 0x39f   :  { %2142 = vrot.lane.b32.xlu1 %v3014_v30, %s3276_s1  ;;  %1552 = vrot.lane.b32.xlu0 %v2984_v24, %s3281_s2  ;;  %v3025_v30 = vcombine.high %v2325_v56, %v2325_v56  ;;  %v2985_v19 = vcombine.low %v1534_v5, %v1541_v11  ;;  %v2356_v24 = vrot.slane %v2351_v45, %v3341_v3 }
 0x3a1   :  { %v2358_v13 = vpack.i.b16 %v3025_v30, %v3025_v30  ;;  %v1970_v30 = vld [vmem:[#allocation2 + $0x14] sm:$0xf] }
 0x3a3   :  { %2144 = vrot.lane.b32.xlu1 %v3015_v4, %s3276_s1  ;;  %2374 = vrot.lane.b32.xlu0 %v3026_v58, %s3282_s21  ;;  %v2363_v28 = vrot.slane %v2358_v13, %v3341_v3 }
 0x3a5   :  { %v3027_v32 = vcombine.low %v2356_v24, %v2363_v28 }
 0x3a7   :  { %2028 = vrot.lane.b32.xlu1 %v3008_v15, %s3278_s23 }
 0x3ab   :  { %2030 = vrot.lane.b32.xlu1 %v3009_v39, %s3278_s23 }
 0x3af   :  { %1904 = vrot.lane.b32.xlu1 %v3003_v55, %s3279_s24 }
 0x3b3   :  { %1786 = vrot.lane.b32.xlu1 %v2997_v37, %s3277_s3 }
 0x3b7   :  { %1672 = vrot.lane.b32.xlu1 %v2991_v50, %s3280_s29 }
 0x3bb   :  { %1554 = vrot.lane.b32.xlu1 %v2985_v19, %s3281_s2 }
 0x3bf   :  { %2376 = vrot.lane.b32.xlu1 %v3027_v32, %s3282_s21 }
 0x406   :  { %v1427_v60 = vpop.permute.xlu1 %1426 }
 0x407   :  { %v1434_v61 = vmul.f32 %v1427_v60, %v3739_v53  ;;  %v1435_v57 = vmul.f32 %v1427_v60, %v3741_v33  ;;  %v1436_v12 = vmul.f32 %v1427_v60, %v3743_v63  ;;  %v1437_v43 = vmul.f32 %v1427_v60, %v3745_v51 }
 0x40a   :  { %v1432_v40 = vpop.permute.xlu0 %1431  ;;  %v1445_v46 = vpop.permute.xlu1 %1444 }
 0x40b   :  { %v1452_v34 = vadd.f32 %v1445_v46, %v1434_v61  ;;  %v1453_v4 = vadd.f32 %v1445_v46, %v1435_v57  ;;  %v1454_v58 = vadd.f32 %v1445_v46, %v1436_v12  ;;  %v1455_v3 = vadd.f32 %v1445_v46, %v1437_v43 }
 0x40c   :  { %v1438_v44 = vmul.f32 %v1432_v40, %v3753_v6  ;;  %v1439_v17 = vmul.f32 %v1432_v40, %v3755_v9  ;;  %v1440_v54 = vmul.f32 %v1432_v40, %v3757_v48  ;;  %v1441_v53 = vmul.f32 %v1432_v40, %v3761_v10 }
 0x40d   :  { %v1460_v7 = vmax.f32 %v1452_v34, 0.0  ;;  %v1461_v33 = vmax.f32 %v1453_v4, 0.0  ;;  %v1462_v15 = vmax.f32 %v1454_v58, 0.0  ;;  %v1463_v63 = vmax.f32 %v1455_v3, 0.0 }
 0x40e   :  { %v1450_v26 = vpop.permute.xlu1 %1449  ;;  %v1903_v11 = vpop.permute.xlu0 %1902 }
 0x40f   :  { %v1456_v51 = vadd.f32 %v1450_v26, %v1438_v44  ;;  %v1457_v47 = vadd.f32 %v1450_v26, %v1439_v17  ;;  %v1458_v0 = vadd.f32 %v1450_v26, %v1440_v54  ;;  %v3839_v41 = vpack.c.bf16 %v1461_v33, %v1460_v7 }
 0x410   :  { %v3841_v38 = vpack.c.bf16 %v1463_v63, %v1462_v15  ;;  %v1459_v16 = vadd.f32 %v1450_v26, %v1441_v53  ;;  %v1906_v3 = vrot.slane %v1903_v11, 4 }
 0x411   :  { %v1464_v6 = vmax.f32 %v1456_v51, 0.0  ;;  %v1465_v29 = vmax.f32 %v1457_v47, 0.0  ;;  %v1466_v9 = vmax.f32 %v1458_v0, 0.0  ;;  %1492 = vst [vmem:[#allocation2 + $0x4] sm:$0xff] %v3839_v41 }
 0x412   :  { %1493 = vst [vmem:[#allocation2 + $0xc] sm:$0xff] %v3841_v38  ;;  %v1467_v48 = vmax.f32 %v1459_v16, 0.0  ;;  %v2261_v10 = vpop.permute.xlu1 %2260  ;;  %v1785_v43 = vpop.permute.xlu0 %1784  ;;  %v3909_v16 = vsel %vm531_vm6, %v1906_v3, %v1903_v11 }
 0x413   :  { %v3845_v14 = vpack.c.bf16 %v1465_v29, %v1464_v6  ;;  %v3850_v31 = vpack.c.bf16 %v1464_v6, %v1460_v7  ;;  %v3852_v59 = vpack.c.bf16 %v1465_v29, %v1461_v33  ;;  %v3855_v21 = vpack.c.bf16 %v1466_v9, %v1462_v15 }
 0x414   :  { %v3847_v20 = vpack.c.bf16 %v1467_v48, %v1466_v9  ;;  %v3857_v52 = vpack.c.bf16 %v1467_v48, %v1463_v63  ;;  %v2264_v27 = vrot.slane %v2261_v10, 4  ;;  %v1788_v26 = vrot.slane %v1785_v43, 4 }
 0x415   :  { %1494 = vst [vmem:[#allocation2 + $0x1c] sm:$0xff] %v3845_v14 }
 0x416   :  { %1495 = vst [vmem:[#allocation2 + $0x24] sm:$0xff] %v3847_v20  ;;  %v2263_v39 = vpop.permute.xlu1 %2262  ;;  %v3865_v24 = vsel %vm333_vm4, %v2264_v27, %v2261_v10  ;;  %v1671_v63 = vpop.permute.xlu0 %1670 }
 0x417   :  { %v2265_v18 = vrot.slane %v2263_v39, 4  ;;  %v2272_v61 = vmul.bf16 %v3839_v41, %v3865_v24 }
 0x418   :  { %v1842_v0 = vld [vmem:[#allocation2] sm:$0xff] }
 0x419   :  { %v2277_v35 = vmul.bf16 %v2265_v18, %v2205_v23  ;;  %v2274_v42 = vmul.bf16 %v2265_v18, %v2202_v49  ;;  %v2267_v5 = vsel %vm176_vm0, %v2264_v27, %v2265_v18  ;;  %v1843_v48 = vld [vmem:[#allocation2 + $0x8] sm:$0xff]  ;;  %v1674_v23 = vrot.slane %v1671_v63, 4 }
 0x41a   :  { %v2143_v62 = vpop.permute.xlu1 %2142  ;;  %v3868_v28 = vsel %vm333_vm4, %v2267_v5, %v2263_v39  ;;  %v1914_v39 = vmul.bf16 %v3909_v16, %v1842_v0  ;;  %v3923_v18 = vsel %vm411_vm2, %v1788_v26, %v1785_v43 }
 0x41b   :  { %2294 = vrot.lane.b32.xlu1 %v2277_v35, %s3280_s29  ;;  %2288 = vrot.lane.b32.xlu0 %v2274_v42, %s3280_s29  ;;  %v2146_v45 = vrot.slane %v2143_v62, 4  ;;  %v2273_v57 = vmul.bf16 %v3841_v38, %v3868_v28  ;;  %v1553_v35 = vpop.permute.xlu0 %1552 }
 0x41d   :  { %v3878_v40 = vsel %vm449_vm1, %v2146_v45, %v2143_v62 }
 0x41e   :  { %v2145_v55 = vpop.permute.xlu1 %2144  ;;  %v2154_v44 = vmul.bf16 %v3839_v41, %v3878_v40 }
 0x41f   :  { %v2147_v56 = vrot.slane %v2145_v55, 4 }
 0x421   :  { %v2159_v37 = vmul.bf16 %v2147_v56, %v2091_v22  ;;  %v2156_v1 = vmul.bf16 %v2147_v56, %v2088_v8  ;;  %v2149_v60 = vsel %vm176_vm0, %v2146_v45, %v2147_v56  ;;  %v1796_v22 = vmul.bf16 %v1842_v0, %v3923_v18  ;;  %v2375_v45 = vpop.permute.xlu0 %2374 }
 0x422   :  { %v2029_v36 = vpop.permute.xlu1 %2028  ;;  %v3881_v46 = vsel %vm449_vm1, %v2149_v60, %v2145_v55  ;;  %v1556_v8 = vrot.slane %v1553_v35, 4  ;;  %v2378_v60 = vrot.slane %v2375_v45, 4 }
 0x423   :  { %2176 = vrot.lane.b32.xlu1 %v2159_v37, %s3277_s3  ;;  %2170 = vrot.lane.b32.xlu0 %v2156_v1, %s3277_s3  ;;  %v2032_v12 = vrot.slane %v2029_v36, 4  ;;  %v2155_v17 = vmul.bf16 %v3841_v38, %v3881_v46 }
 0x425   :  { %v3893_v54 = vsel %vm569_vm5, %v2032_v12, %v2029_v36  ;;  %v1844_v36 = vld [vmem:[#allocation2 + $0x10] sm:$0xf] }
 0x426   :  { %v2031_v25 = vpop.permute.xlu1 %2030  ;;  %v2040_v51 = vmul.bf16 %v3839_v41, %v3893_v54 }
 0x427   :  { %v2033_v50 = vrot.slane %v2031_v25, 4 }
 0x429   :  { %v2045_v13 = vmul.bf16 %v2033_v50, %v1973_v2  ;;  %v2042_v19 = vmul.bf16 %v2033_v50, %v1970_v30  ;;  %v2035_v4 = vsel %vm176_vm0, %v2032_v12, %v2033_v50 }
 0x42a   :  { %v1905_v32 = vpop.permute.xlu1 %1904  ;;  %v3896_v53 = vsel %vm569_vm5, %v2035_v4, %v2031_v25  ;;  %v3940_v25 = vsel %vm295_vm7, %v1674_v23, %v1671_v63 }
 0x42b   :  { %2062 = vrot.lane.b32.xlu1 %v2045_v13, %s3279_s24  ;;  %2056 = vrot.lane.b32.xlu0 %v2042_v19, %s3279_s24  ;;  %v3884_v58 = vrot.slane %v1905_v32, 4  ;;  %v2041_v47 = vmul.bf16 %v3841_v38, %v3896_v53  ;;  %v1682_v50 = vmul.bf16 %v1842_v0, %v3940_v25  ;;  %v1730_v19 = vld [vmem:[#allocation2 + $0x10] sm:$0xf] }
 0x42d   :  { %v1909_v33 = vsel %vm176_vm0, %v1906_v3, %v3884_v58  ;;  %v1916_v27 = vmul.bf16 %v3884_v58, %v1844_v36 }
 0x42e   :  { %v1787_v34 = vpop.permute.xlu1 %1786  ;;  %v3912_v6 = vsel %vm531_vm6, %v1909_v33, %v1905_v32  ;;  %v2276_v32 = vmul.bf16 %v3847_v20, %v3868_v28  ;;  %v1612_v28 = vld [vmem:[#allocation2 + $0x10] sm:$0xf]  ;;  %v1846_v33 = vld [vmem:[#allocation2 + $0x20] sm:$0xff] }
 0x42f   :  { %2286 = vrot.lane.b32.xlu1 %v2273_v57, %s3280_s29  ;;  %2284 = vrot.lane.b32.xlu0 %v2272_v61, %s3280_s29  ;;  %v3900_v15 = vrot.slane %v1787_v34, 4  ;;  %v1915_v49 = vmul.bf16 %v3912_v6, %v1843_v48  ;;  %v1558_v57 = vsel %vm174_vm3, %v1556_v8, %v1553_v35  ;;  %v1918_v63 = vmul.bf16 %v3912_v6, %v1846_v33 }
 0x430   :  { %v1564_v43 = vmul.bf16 %v1842_v0, %v1558_v57  ;;  %v2380_v0 = vsel %vm213_vm8, %v2378_v60, %v2375_v45 }
 0x431   :  { %v1791_v29 = vsel %vm176_vm0, %v1788_v26, %v3900_v15  ;;  %v1798_v61 = vmul.bf16 %v3900_v15, %v1730_v19  ;;  %v2157_v26 = vmul.bf16 %v3845_v14, %v3878_v40  ;;  %v2386_v6 = vmul.bf16 %v3839_v41, %v2380_v0  ;;  %v1615_v41 = vld [vmem:[#allocation2 + $0x28] sm:$0xf] }
 0x432   :  { %v1673_v7 = vpop.permute.xlu1 %1672  ;;  %v1792_v42 = vsel %vm411_vm2, %v1791_v29, %v1787_v34  ;;  %v2158_v34 = vmul.bf16 %v3847_v20, %v3881_v46  ;;  %v1731_v29 = vld [vmem:[#allocation2 + $0x18] sm:$0xff] }
 0x433   :  { %2168 = vrot.lane.b32.xlu1 %v2155_v17, %s3277_s3  ;;  %2166 = vrot.lane.b32.xlu0 %v2154_v44, %s3277_s3  ;;  %v3916_v9 = vrot.slane %v1673_v7, 4  ;;  %v1797_v56 = vmul.bf16 %v1843_v48, %v1792_v42  ;;  %v1498_v17 = vld [vmem:[#allocation2 + $0x10] sm:$0xf] }
 0x435   :  { %v1677_v62 = vsel %vm176_vm0, %v1674_v23, %v3916_v9  ;;  %v1684_v44 = vmul.bf16 %v3916_v9, %v1612_v28  ;;  %v1685_v23 = vmul.bf16 %v1731_v29, %v3940_v25 }
 0x436   :  { %v1555_v10 = vpop.permute.xlu1 %1554  ;;  %v1678_v37 = vsel %vm295_vm7, %v1677_v62, %v1673_v7  ;;  %v2044_v7 = vmul.bf16 %v3847_v20, %v3896_v53  ;;  %v1800_v53 = vmul.bf16 %v1846_v33, %v1792_v42  ;;  %v3163_v42 = vld [vmem:[#allocation7 + $0x4] ss:$8 sps:$4 sm:$0xff]   ;;  %v2320_v62 = vld [vmem:[#allocation2 + $0x14] sm:$0xf] }
 0x437   :  { %2052 = vrot.lane.b32.xlu0 %v2040_v51, %s3279_s24  ;;  %2054 = vrot.lane.b32.xlu1 %v2041_v47, %s3279_s24  ;;  %v3928_v55 = vrot.slane %v1555_v10, 4  ;;  %v1683_v2 = vmul.bf16 %v1843_v48, %v1678_v37  ;;  %v1847_v51 = vld [vmem:[#allocation2 + $0x28] sm:$0xf]  ;;  %v2043_v47 = vmul.bf16 %v3845_v14, %v3893_v54  ;;  %v1686_v40 = vmul.bf16 %v1846_v33, %v1678_v37 }
 0x438   :  { %v1917_v54 = vmul.bf16 %v3909_v16, %v1731_v29  ;;  %v1567_v16 = vmul.bf16 %v1731_v29, %v1558_v57  ;;  %3066 = vmatprep.mubr.msk.bf16.mxu0 %vm333_vm4, %v3163_v42  ;;  %3067 = vmatprep.mubr.msk.bf16.mxu1 %vm333_vm4, %v3163_v42 }
 0x439   :  { %v1559_v1 = vsel %vm176_vm0, %v1556_v8, %v3928_v55  ;;  %v1566_v46 = vmul.bf16 %v3928_v55, %v1498_v17 }
 0x43a   :  { %v1560_v30 = vsel %vm174_vm3, %v1559_v1, %v1555_v10  ;;  %v2377_v5 = vpop.permute.xlu1 %2376 }
 0x43b   :  { %1926 = vrot.lane.b32.xlu0 %v1914_v39, %s3278_s23  ;;  %1928 = vrot.lane.b32.xlu1 %v1915_v49, %s3278_s23  ;;  %v1565_v11 = vmul.bf16 %v1843_v48, %v1560_v30  ;;  %v3946_v13 = vrot.slane %v2377_v5, 4  ;;  %v1733_v48 = vld [vmem:[#allocation2 + $0x28] sm:$0xf]  ;;  %v1568_v39 = vmul.bf16 %v1846_v33, %v1560_v30  ;;  %v1687_v49 = vmul.bf16 %v3916_v9, %v1615_v41 }
 0x43c   :  { %v1801_v10 = vmul.bf16 %v3900_v15, %v1733_v48  ;;  %v1501_v15 = vld [vmem:[#allocation2 + $0x28] sm:$0xf] }
 0x43d   :  { %v2381_v12 = vsel %vm176_vm0, %v2378_v60, %v3946_v13  ;;  %v1569_v35 = vmul.bf16 %v3928_v55, %v1501_v15  ;;  %v2388_v55 = vmul.bf16 %v3946_v13, %v2320_v62 }
 0x43e   :  { %v2382_v4 = vsel %vm213_vm8, %v2381_v12, %v2377_v5 }
 0x43f   :  { %1808 = vrot.lane.b32.xlu0 %v1796_v22, %s3276_s1  ;;  %1810 = vrot.lane.b32.xlu1 %v1797_v56, %s3276_s1  ;;  %v2387_v3 = vmul.bf16 %v3841_v38, %v2382_v4  ;;  %v2275_v38 = vmul.bf16 %v3845_v14, %v3865_v24  ;;  %v1919_v24 = vmul.bf16 %v3884_v58, %v1847_v51  ;;  %v2323_v22 = vld [vmem:[#allocation2 + $0x2c] sm:$0xf] }
 0x440   :  { %v1799_v58 = vmul.bf16 %v3923_v18, %v1731_v29  ;;  %v2389_v18 = vmul.bf16 %v3845_v14, %v2380_v0  ;;  %v2390_v9 = vmul.bf16 %v3847_v20, %v2382_v4  ;;  %v2391_v8 = vmul.bf16 %v3946_v13, %v2323_v22 }
 0x443   :  { %1930 = vrot.lane.b32.xlu0 %v1916_v27, %s3278_s23  ;;  %1696 = vrot.lane.b32.xlu1 %v1683_v2, %s3274_s20 }
 0x447   :  { %1694 = vrot.lane.b32.xlu0 %v1682_v50, %s3274_s20  ;;  %1578 = vrot.lane.b32.xlu1 %v1565_v11, %s3282_s21 }
 0x44b   :  { %1812 = vrot.lane.b32.xlu0 %v1798_v61, %s3276_s1  ;;  %2292 = vrot.lane.b32.xlu1 %v2276_v32, %s3280_s29 }
 0x44f   :  { %1576 = vrot.lane.b32.xlu0 %v1564_v43, %s3282_s21  ;;  %2174 = vrot.lane.b32.xlu1 %v2158_v34, %s3277_s3 }
 0x453   :  { %1698 = vrot.lane.b32.xlu0 %v1684_v44, %s3274_s20  ;;  %2400 = vrot.lane.b32.xlu1 %v2387_v3, %s3281_s2 }
 0x457   :  { %1580 = vrot.lane.b32.xlu0 %v1566_v46, %s3282_s21  ;;  %2060 = vrot.lane.b32.xlu1 %v2044_v7, %s3279_s24 }
 0x45b   :  { %2290 = vrot.lane.b32.xlu0 %v2275_v38, %s3280_s29  ;;  %1934 = vrot.lane.b32.xlu1 %v1918_v63, %s3278_s23 }
 0x45f   :  { %2172 = vrot.lane.b32.xlu0 %v2157_v26, %s3277_s3  ;;  %1816 = vrot.lane.b32.xlu1 %v1800_v53, %s3276_s1 }
 0x463   :  { %2058 = vrot.lane.b32.xlu0 %v2043_v47, %s3279_s24  ;;  %1936 = vrot.lane.b32.xlu1 %v1919_v24, %s3278_s23 }
 0x467   :  { %2398 = vrot.lane.b32.xlu0 %v2386_v6, %s3281_s2  ;;  %1702 = vrot.lane.b32.xlu1 %v1686_v40, %s3274_s20 }
 0x46b   :  { %1932 = vrot.lane.b32.xlu0 %v1917_v54, %s3278_s23  ;;  %1818 = vrot.lane.b32.xlu1 %v1801_v10, %s3276_s1 }
 0x46f   :  { %1814 = vrot.lane.b32.xlu0 %v1799_v58, %s3276_s1  ;;  %1584 = vrot.lane.b32.xlu1 %v1568_v39, %s3282_s21 }
 0x473   :  { %1700 = vrot.lane.b32.xlu0 %v1685_v23, %s3274_s20  ;;  %1704 = vrot.lane.b32.xlu1 %v1687_v49, %s3274_s20 }
 0x477   :  { %1582 = vrot.lane.b32.xlu0 %v1567_v16, %s3282_s21  ;;  %1586 = vrot.lane.b32.xlu1 %v1569_v35, %s3282_s21 }
 0x47b   :  { %2404 = vrot.lane.b32.xlu0 %v2389_v18, %s3281_s2  ;;  %2406 = vrot.lane.b32.xlu1 %v2390_v9, %s3281_s2 }
 0x47f   :  { %2402 = vrot.lane.b32.xlu0 %v2388_v55, %s3281_s2  ;;  %2408 = vrot.lane.b32.xlu1 %v2391_v8, %s3281_s2 }
 0x48d   :  { %v2289_v56 = vpop.permute.xlu0 %2288  ;;  %v2295_v37 = vpop.permute.xlu1 %2294 }
 0x48e   :  { %v2298_v43 = vrot.slane %v2289_v56, 4  ;;  %v2301_v28 = vrot.slane %v2295_v37, 4 }
 0x495   :  { %v2171_v1 = vpop.permute.xlu0 %2170  ;;  %v2177_v14 = vpop.permute.xlu1 %2176 }
 0x496   :  { %v2180_v7 = vrot.slane %v2171_v1, 4  ;;  %v2183_v33 = vrot.slane %v2177_v14, 4 }
 0x49d   :  { %v2057_v36 = vpop.permute.xlu0 %2056  ;;  %v2063_v20 = vpop.permute.xlu1 %2062 }
 0x49e   :  { %v2066_v41 = vrot.slane %v2057_v36, 4  ;;  %v2069_v15 = vrot.slane %v2063_v20, 4 }
 0x4a1   :  { %v4014_v27 = vpop.permute.xlu0 %2284  ;;  %v2287_v2 = vpop.permute.xlu1 %2286 }
 0x4a2   :  { %v2297_v12 = vrot.slane %v2287_v2, 4  ;;  %v2296_v16 = vrot.slane %v4014_v27, 4 }
 0x4a4   :  { %v2304_v3 = vsel %vm176_vm0, %v2297_v12, %v2298_v43  ;;  %v2302_v14 = vsel %vm176_vm0, %v2296_v16, %v2297_v12 }
 0x4a5   :  { %v4016_v25 = vpop.permute.xlu0 %2166  ;;  %v4018_v30 = vpop.permute.xlu1 %2168  ;;  %v2305_v38 = vsel %vm295_vm7, %v2287_v2, %v2304_v3  ;;  %v2303_v2 = vsel %vm295_vm7, %v4014_v27, %v2302_v14 }
 0x4a6   :  { %v2179_v44 = vrot.slane %v4018_v30, 4  ;;  %v2178_v9 = vrot.slane %v4016_v25, 4 }
 0x4a8   :  { %v2186_v51 = vsel %vm176_vm0, %v2179_v44, %v2180_v7  ;;  %v2184_v43 = vsel %vm176_vm0, %v2178_v9, %v2179_v44 }
 0x4a9   :  { %v4020_v5 = vpop.permute.xlu0 %2052  ;;  %v4022_v50 = vpop.permute.xlu1 %2054  ;;  %v2187_v40 = vsel %vm411_vm2, %v4018_v30, %v2186_v51 }
 0x4aa   :  { %v2065_v54 = vrot.slane %v4022_v50, 4  ;;  %v2064_v20 = vrot.slane %v4020_v5, 4 }
 0x4ac   :  { %v2072_v35 = vsel %vm176_vm0, %v2065_v54, %v2066_v41 }
 0x4ad   :  { %v4024_v11 = vpop.permute.xlu0 %1926  ;;  %v4026_v45 = vpop.permute.xlu1 %1928  ;;  %v2073_v62 = vsel %vm531_vm6, %v4022_v50, %v2072_v35 }
 0x4b1   :  { %v4028_v13 = vpop.permute.xlu0 %1808  ;;  %v4030_v19 = vpop.permute.xlu1 %1810 }
 0x4b5   :  { %v4032_v32 = vpop.permute.xlu0 %1930  ;;  %v4034_v60 = vpop.permute.xlu1 %1696 }
 0x4b6   :  { %v1940_v12 = vrot.slane %v4032_v32, 4 }
 0x4b9   :  { %v4036_v61 = vpop.permute.xlu0 %1694  ;;  %v4038_v57 = vpop.permute.xlu1 %1578 }
 0x4bd   :  { %v4040_v34 = vpop.permute.xlu0 %1812  ;;  %v2293_v4 = vpop.permute.xlu1 %2292 }
 0x4be   :  { %v2300_v17 = vrot.slane %v2293_v4, 4 }
 0x4c0   :  { %v2308_v46 = vsel %vm176_vm0, %v2300_v17, %v2301_v28 }
 0x4c1   :  { %v2309_v63 = vsel %vm295_vm7, %v2293_v4, %v2308_v46  ;;  %v4047_v26 = vpop.permute.xlu0 %1576  ;;  %v2175_v53 = vpop.permute.xlu1 %2174  ;;  %v1939_v46 = vrot.slane %v4026_v45, 4 }
 0x4c2   :  { %v3060_v47 = vcombine.low %v2305_v38, %v2309_v63  ;;  %v3061_v24 = vcombine.high %v2305_v38, %v2309_v63  ;;  %v2182_v0 = vrot.slane %v2175_v53, 4  ;;  %v2070_v63 = vsel %vm176_vm0, %v2064_v20, %v2065_v54 }
 0x4c4   :  { %v2190_v6 = vsel %vm176_vm0, %v2182_v0, %v2183_v33  ;;  %2705 = vmatprep.subr.bf16.mxu1 %v3061_v24  ;;  %v1938_v24 = vrot.slane %v4024_v11, 4 }
 0x4c5   :  { %v2191_v29 = vsel %vm411_vm2, %v2175_v53, %v2190_v6  ;;  %v4054_v48 = vpop.permute.xlu0 %1698  ;;  %2706 = vmatpush1.bf16.msra.mxu1 %v3060_v47  ;;  %v4056_v10 = vpop.permute.xlu1 %2400  ;;  %v1946_v47 = vsel %vm176_vm0, %v1939_v46, %v1940_v12 }
 0x4c6   :  { %v3056_v58 = vcombine.low %v2187_v40, %v2191_v29  ;;  %v3057_v39 = vcombine.high %v2187_v40, %v2191_v29  ;;  %v2071_v40 = vsel %vm531_vm6, %v4020_v5, %v2070_v63  ;;  %v1820_v5 = vrot.slane %v4028_v13, 4 }
 0x4c7   :  { %v1708_v20 = vrot.slane %v4054_v48, 4 }
 0x4c8   :  { %2707 = vmatprep.subr.bf16.mxu1 %v3057_v39 }
 0x4c9   :  { %v4059_v23 = vpop.permute.xlu0 %1580  ;;  %2708 = vmatpush1.bf16.msra.mxu1 %v3056_v58  ;;  %v2061_v49 = vpop.permute.xlu1 %2060 }
 0x4ca   :  { %v2068_v42 = vrot.slane %v2061_v49, 4 }
 0x4cc   :  { %v2076_v18 = vsel %vm176_vm0, %v2068_v42, %v2069_v15  ;;  %v1822_v15 = vrot.slane %v4040_v34, 4 }
 0x4cd   :  { %v2077_v22 = vsel %vm531_vm6, %v2061_v49, %v2076_v18  ;;  %v2291_v55 = vpop.permute.xlu0 %2290  ;;  %v4068_v8 = vpop.permute.xlu1 %1934  ;;  %v1947_v49 = vsel %vm569_vm5, %v4026_v45, %v1946_v47  ;;  %v1944_v18 = vsel %vm176_vm0, %v1938_v24, %v1939_v46 }
 0x4ce   :  { %v3052_v56 = vcombine.low %v2073_v62, %v2077_v22  ;;  %v3053_v37 = vcombine.high %v2073_v62, %v2077_v22  ;;  %v2299_v1 = vrot.slane %v2291_v55, 4  ;;  %v1942_v44 = vrot.slane %v4068_v8, 4 }
 0x4d0   :  { %v2306_v36 = vsel %vm176_vm0, %v2299_v1, %v2300_v17  ;;  %2709 = vmatprep.subr.bf16.mxu1 %v3053_v37  ;;  %v2185_v17 = vsel %vm411_vm2, %v4016_v25, %v2184_v43 }
 0x4d1   :  { %v2307_v30 = vsel %vm295_vm7, %v2291_v55, %v2306_v36  ;;  %v2173_v50 = vpop.permute.xlu0 %2172  ;;  %2710 = vmatpush1.bf16.msra.mxu1 %v3052_v56  ;;  %v4077_v4 = vpop.permute.xlu1 %1816  ;;  %v1706_v56 = vrot.slane %v4036_v61, 4  ;;  %v1707_v36 = vrot.slane %v4034_v60, 4 }
 0x4d2   :  { %v3058_v28 = vcombine.low %v2303_v2, %v2307_v30  ;;  %v3059_v3 = vcombine.high %v2303_v2, %v2307_v30  ;;  %v2181_v7 = vrot.slane %v2173_v50, 4  ;;  %2711 = vmatprep.subr.bf16.mxu1 %v3857_v52  ;;  %v1824_v22 = vrot.slane %v4077_v4, 4 }
 0x4d3   :  { %v1712_v48 = vsel %vm176_vm0, %v1706_v56, %v1707_v36 }
 0x4d4   :  { %v2188_v27 = vsel %vm176_vm0, %v2181_v7, %v2182_v0  ;;  %2662 = vmatprep.subr.bf16.mxu0 %v3059_v3  ;;  %v1588_v7 = vrot.slane %v4047_v26, 4 }
 0x4d5   :  { %v2189_v33 = vsel %vm411_vm2, %v2173_v50, %v2188_v27  ;;  %v2059_v38 = vpop.permute.xlu0 %2058  ;;  %2663 = vmatpush1.bf16.msra.mxu0 %v3058_v28  ;;  %2712 = vmatpush1.bf16.msra.mxu1 %v3855_v21  ;;  %v1937_v52 = vpop.permute.xlu1 %1936  ;;  %v1590_v27 = vrot.slane %v4059_v23, 4 }
 0x4d6   :  { %v3054_v32 = vcombine.low %v2185_v17, %v2189_v33  ;;  %v3055_v53 = vcombine.high %v2185_v17, %v2189_v33  ;;  %v2067_v51 = vrot.slane %v2059_v38, 4  ;;  %v1943_v25 = vrot.slane %v1937_v52, 4 }
 0x4d8   :  { %v2074_v0 = vsel %vm176_vm0, %v2067_v51, %v2068_v42  ;;  %v1950_v6 = vsel %vm176_vm0, %v1942_v44, %v1943_v25  ;;  %2664 = vmatprep.subr.bf16.mxu0 %v3055_v53  ;;  %v1821_v42 = vrot.slane %v4030_v19, 4  ;;  %v1713_v53 = vsel %vm333_vm4, %v4036_v61, %v1712_v48 }
 0x4d9   :  { %v2075_v29 = vsel %vm531_vm6, %v2059_v38, %v2074_v0  ;;  %v4096_v21 = vpop.permute.xlu0 %2398  ;;  %2665 = vmatpush1.bf16.msra.mxu0 %v3054_v32  ;;  %v4098_v54 = vpop.permute.xlu1 %1702  ;;  %v1951_v58 = vsel %vm569_vm5, %v4068_v8, %v1950_v6  ;;  %v1945_v8 = vsel %vm569_vm5, %v4024_v11, %v1944_v18 }
 0x4da   :  { %v3050_v39 = vcombine.low %v2071_v40, %v2075_v29  ;;  %v3051_v41 = vcombine.high %v2071_v40, %v2075_v29  ;;  %v3044_v16 = vcombine.low %v1947_v49, %v1951_v58  ;;  %v3045_v35 = vcombine.high %v1947_v49, %v1951_v58 }
 0x4db   :  { %v1828_v34 = vsel %vm176_vm0, %v1821_v42, %v1822_v15  ;;  %v1826_v14 = vsel %vm176_vm0, %v1820_v5, %v1821_v42  ;;  %v2410_v6 = vrot.slane %v4096_v21, 4 }
 0x4dc   :  { %2666 = vmatprep.subr.bf16.mxu0 %v3051_v41  ;;  %2713 = vmatprep.subr.bf16.mxu1 %v3045_v35  ;;  %v1829_v3 = vsel %vm449_vm1, %v4030_v19, %v1828_v34  ;;  %v1710_v19 = vrot.slane %v4098_v54, 4  ;;  %v2411_v35 = vrot.slane %v4056_v10, 4 }
 0x4dd   :  { %v1933_v9 = vpop.permute.xlu0 %1932  ;;  %2667 = vmatpush1.bf16.msra.mxu0 %v3050_v39  ;;  %v1819_v62 = vpop.permute.xlu1 %1818  ;;  %2714 = vmatpush1.bf16.msra.mxu1 %v3044_v16 }
 0x4de   :  { %v1941_v55 = vrot.slane %v1933_v9, 4  ;;  %v1825_v45 = vrot.slane %v1819_v62, 4  ;;  %2668 = vmatprep.subr.bf16.mxu0 %v3852_v59 }
 0x4e0   :  { %v1948_v37 = vsel %vm176_vm0, %v1941_v55, %v1942_v44  ;;  %v1832_v1 = vsel %vm176_vm0, %v1824_v22, %v1825_v45  ;;  %v1714_v44 = vsel %vm176_vm0, %v1707_v36, %v1708_v20 }
 0x4e1   :  { %v1949_v2 = vsel %vm569_vm5, %v1933_v9, %v1948_v37  ;;  %v1815_v59 = vpop.permute.xlu0 %1814  ;;  %2669 = vmatpush1.bf16.msra.mxu0 %v3850_v31  ;;  %v1585_v30 = vpop.permute.xlu1 %1584  ;;  %v1833_v11 = vsel %vm449_vm1, %v4077_v4, %v1832_v1  ;;  %v1827_v31 = vsel %vm449_vm1, %v4028_v13, %v1826_v14  ;;  %v1589_v4 = vrot.slane %v4038_v57, 4 }
 0x4e2   :  { %v3042_v50 = vcombine.low %v1945_v8, %v1949_v2  ;;  %v3043_v43 = vcombine.high %v1945_v8, %v1949_v2  ;;  %v1823_v28 = vrot.slane %v1815_v59, 4  ;;  %v3040_v12 = vcombine.low %v1829_v3, %v1833_v11 }
 0x4e3   :  { %v3041_v17 = vcombine.high %v1829_v3, %v1833_v11  ;;  %v1594_v51 = vsel %vm176_vm0, %v1588_v7, %v1589_v4  ;;  %v1596_v25 = vsel %vm176_vm0, %v1589_v4, %v1590_v27  ;;  %v1715_v0 = vsel %vm333_vm4, %v4034_v60, %v1714_v44  ;;  %v3165_v7 = vld [vmem:[#allocation7] ss:$8 sps:$4 sm:$0xff]  }
 0x4e4   :  { %v1830_v46 = vsel %vm176_vm0, %v1823_v28, %v1824_v22  ;;  %2670 = vmatprep.subr.bf16.mxu0 %v3043_v43  ;;  %v1592_v40 = vrot.slane %v1585_v30, 4  ;;  %v1595_v60 = vsel %vm213_vm8, %v4047_v26, %v1594_v51  ;;  %v1597_v62 = vsel %vm213_vm8, %v4038_v57, %v1596_v25 }
 0x4e5   :  { %v1831_v33 = vsel %vm449_vm1, %v1815_v59, %v1830_v46  ;;  %2715 = vmatprep.subr.bf16.mxu1 %v3041_v17  ;;  %v1701_v38 = vpop.permute.xlu0 %1700  ;;  %2671 = vmatpush1.bf16.msra.mxu0 %v3042_v50  ;;  %v1705_v63 = vpop.permute.xlu1 %1704 }
 0x4e6   :  { %v3038_v52 = vcombine.low %v1827_v31, %v1831_v33  ;;  %v3039_v23 = vcombine.high %v1827_v31, %v1831_v33  ;;  %v1709_v32 = vrot.slane %v1701_v38, 4  ;;  %2716 = vmatpush1.bf16.msra.mxu1 %v3040_v12  ;;  %v1711_v13 = vrot.slane %v1705_v63, 4 }
 0x4e8   :  { %v1716_v47 = vsel %vm176_vm0, %v1709_v32, %v1710_v19  ;;  %v1718_v24 = vsel %vm176_vm0, %v1710_v19, %v1711_v13  ;;  %2672 = vmatprep.subr.bf16.mxu0 %v3039_v23 }
 0x4e9   :  { %v1717_v29 = vsel %vm333_vm4, %v1701_v38, %v1716_v47  ;;  %v1583_v58 = vpop.permute.xlu0 %1582  ;;  %2673 = vmatpush1.bf16.msra.mxu0 %v3038_v52  ;;  %v1587_v61 = vpop.permute.xlu1 %1586  ;;  %v1719_v39 = vsel %vm333_vm4, %v4098_v54, %v1718_v24  ;;  %v2416_v54 = vsel %vm176_vm0, %v2410_v6, %v2411_v35 }
 0x4ea   :  { %v3034_v41 = vcombine.low %v1713_v53, %v1717_v29  ;;  %v3035_v49 = vcombine.high %v1713_v53, %v1717_v29  ;;  %v1591_v15 = vrot.slane %v1583_v58, 4  ;;  %v1593_v16 = vrot.slane %v1587_v61, 4 }
 0x4eb   :  { %v3036_v5 = vcombine.low %v1715_v0, %v1719_v39  ;;  %v3037_v42 = vcombine.high %v1715_v0, %v1719_v39  ;;  %v2417_v57 = vsel %vm174_vm3, %v4096_v21, %v2416_v54 }
 0x4ec   :  { %v1598_v18 = vsel %vm176_vm0, %v1591_v15, %v1592_v40  ;;  %v1600_v9 = vsel %vm176_vm0, %v1592_v40, %v1593_v16  ;;  %2674 = vmatprep.subr.bf16.mxu0 %v3035_v49 }
 0x4ed   :  { %v1599_v22 = vsel %vm213_vm8, %v1583_v58, %v1598_v18  ;;  %2717 = vmatprep.subr.bf16.mxu1 %v3037_v42  ;;  %v2405_v55 = vpop.permute.xlu0 %2404  ;;  %2675 = vmatpush1.bf16.msra.mxu0 %v3034_v41  ;;  %v2407_v45 = vpop.permute.xlu1 %2406  ;;  %v1601_v34 = vsel %vm213_vm8, %v1585_v30, %v1600_v9 }
 0x4ee   :  { %v3030_v8 = vcombine.low %v1595_v60, %v1599_v22  ;;  %v3031_v26 = vcombine.high %v1595_v60, %v1599_v22  ;;  %v2413_v56 = vrot.slane %v2405_v55, 4  ;;  %2718 = vmatpush1.bf16.msra.mxu1 %v3036_v5  ;;  %v2414_v37 = vrot.slane %v2407_v45, 4 }
 0x4ef   :  { %v3032_v1 = vcombine.low %v1597_v62, %v1601_v34  ;;  %v3033_v14 = vcombine.high %v1597_v62, %v1601_v34 }
 0x4f0   :  { %v2420_v36 = vsel %vm176_vm0, %v2413_v56, %v2414_v37  ;;  %2676 = vmatprep.subr.bf16.mxu0 %v3031_v26 }
 0x4f1   :  { %2719 = vmatprep.subr.bf16.mxu1 %v3033_v14  ;;  %v2403_v20 = vpop.permute.xlu0 %2402  ;;  %2677 = vmatpush1.bf16.msra.mxu0 %v3030_v8  ;;  %v2409_v2 = vpop.permute.xlu1 %2408  ;;  %v2421_v59 = vsel %vm174_vm3, %v2405_v55, %v2420_v36 }
 0x4f2   :  { %v2412_v30 = vrot.slane %v2403_v20, 4  ;;  %2720 = vmatpush1.bf16.msra.mxu1 %v3032_v1  ;;  %v2415_v11 = vrot.slane %v2409_v2, 4  ;;  %v3062_v50 = vcombine.low %v2417_v57, %v2421_v59  ;;  %v3063_v43 = vcombine.high %v2417_v57, %v2421_v59  ;;  %v2748_v1 = vld [vmem:[%s4211_s6] sm:$0xff]  ;;  %v2749_v57 = vld [vmem:[%s4211_s6 + $0x8] sm:$0xff] }
 0x4f3   :  { %v2750_v2 = vld [vmem:[%s4212_s7] sm:$0xff] }
 0x4f4   :  { %v2418_v28 = vsel %vm176_vm0, %v2411_v35, %v2412_v30  ;;  %v2422_v3 = vsel %vm176_vm0, %v2414_v37, %v2415_v11  ;;  %2692 = vmatprep.subr.bf16.mxu0 %v3063_v43  ;;  %v2751_v30 = vld [vmem:[%s4212_s7 + $0x8] sm:$0xff] }
 0x4f5   :  { %2693 = vmatpush2.bf16.msra.mxu0 %v3062_v50  ;;  %v2419_v21 = vsel %vm174_vm3, %v4056_v10, %v2418_v28  ;;  %v2423_v12 = vsel %vm174_vm3, %v2407_v45, %v2422_v3 }
 0x4f6   :  { %v3064_v17 = vcombine.low %v2419_v21, %v2423_v12  ;;  %v3065_v48 = vcombine.high %v2419_v21, %v2423_v12  ;;  %v2834_v21 = vld [vmem:[%s4205_s0] sm:$0xff] }
 0x4f8   :  { %2695 = vmatmul.mubr.bf16.vlgmr.msra.gmra.mxu0 %v3165_v7  ;;  %2735 = vmatprep.subr.bf16.mxu1 %v3065_v48  ;;  %v2836_v48 = vld [vmem:[%s4205_s0 + $0x10] sm:$0xff] }
 0x4f9   :  { %2736 = vmatpush2.bf16.msra.mxu1 %v3064_v17  ;;  %v2835_v17 = vld [vmem:[%s4205_s0 + $0x8] sm:$0xff] }
 0x4fc   :  { %2738 = vmatmul.mubr.bf16.vlgmr.msra.gmra.mxu1 %v3165_v7 }
 0x5b8   :  { %v2696_v27 = vpop.f32.mrf.mxu0 }
 0x5ba   :  { %v2698_v31 = vpop.f32.mrf.mxu0 }
 0x5bb   :  { %v2752_v46 = vadd.f32 %v2698_v31, %v2696_v27 }
 0x5bc   :  { %v2700_v4 = vpop.f32.mrf.mxu0  ;;  %v2739_v44 = vpop.f32.mrf.mxu1 }
 0x5bd   :  { %v2753_v19 = vadd.f32 %v2752_v46, %v2739_v44 }
 0x5be   :  { %v2702_v33 = vpop.f32.mrf.mxu0  ;;  %v2741_v38 = vpop.f32.mrf.mxu1 }
 0x5bf   :  { %v2757_v63 = vadd.f32 %v2702_v33, %v2700_v4  ;;  %v2754_v52 = vadd.f32 %v2753_v19, %v2741_v38 }
 0x5c0   :  { %v2743_v23 = vpop.f32.mrf.mxu1 }
 0x5c1   :  { %v2758_v10 = vadd.f32 %v2757_v63, %v2743_v23  ;;  %2755 = vadd.xlane.f32.xlu0 %v2754_v52  ;;  %v2838_v52 = vld [vmem:[%s4205_s0 + $0x20] sm:$0xff] }
 0x5c2   :  { %v2745_v32 = vpop.f32.mrf.mxu1 }
 0x5c3   :  { %v2759_v13 = vadd.f32 %v2758_v10, %v2745_v32 }
 0x5c5   :  { %2760 = vadd.xlane.f32.xlu1 %v2759_v13 }
 0x64a   :  { %v2756_v53 = vpop.xlane.xlu0 %2755 }
 0x64b   :  { %v2762_v51 = vmul.f32 0.001953125, %v2756_v53  ;;  %v2839_v53 = vld [vmem:[%s4205_s0 + $0x28] sm:$0xff] }
 0x64d   :  { %v2764_v25 = vsub.f32 %v2696_v27, %v2762_v51  ;;  %v2765_v47 = vsub.f32 %v2698_v31, %v2762_v51  ;;  %v2766_v24 = vsub.f32 %v2739_v44, %v2762_v51  ;;  %v2767_v6 = vsub.f32 %v2741_v38, %v2762_v51  ;;  %v2837_v27 = vld [vmem:[%s4205_s0 + $0x18] sm:$0xff]  ;;  %v2840_v51 = vld [vmem:[%s4205_s0 + $0x30] sm:$0xff] }
 0x64e   :  { %v2761_v0 = vpop.xlane.xlu1 %2760 }
 0x64f   :  { %v2763_v40 = vmul.f32 0.001953125, %v2761_v0  ;;  %v2772_v29 = vmul.f32 %v2764_v25, %v2764_v25  ;;  %v2773_v58 = vmul.f32 %v2765_v47, %v2765_v47  ;;  %v2774_v61 = vmul.f32 %v2766_v24, %v2766_v24 }
 0x650   :  { %v2775_v16 = vmul.f32 %v2767_v6, %v2767_v6 }
 0x651   :  { %v2768_v39 = vsub.f32 %v2700_v4, %v2763_v40  ;;  %v2769_v41 = vsub.f32 %v2702_v33, %v2763_v40  ;;  %v2770_v49 = vsub.f32 %v2743_v23, %v2763_v40  ;;  %v2780_v15 = vadd.f32 %v2773_v58, %v2772_v29 }
 0x652   :  { %v2771_v5 = vsub.f32 %v2745_v32, %v2763_v40 }
 0x653   :  { %v2781_v35 = vadd.f32 %v2780_v15, %v2774_v61  ;;  %v2776_v42 = vmul.f32 %v2768_v39, %v2768_v39  ;;  %v2777_v60 = vmul.f32 %v2769_v41, %v2769_v41  ;;  %v2778_v9 = vmul.f32 %v2770_v49, %v2770_v49 }
 0x654   :  { %v2779_v54 = vmul.f32 %v2771_v5, %v2771_v5 }
 0x655   :  { %v2782_v18 = vadd.f32 %v2781_v35, %v2775_v16  ;;  %v2785_v62 = vadd.f32 %v2777_v60, %v2776_v42 }
 0x657   :  { %2783 = vadd.xlane.f32.xlu0 %v2782_v18  ;;  %v2786_v22 = vadd.f32 %v2785_v62, %v2778_v9 }
 0x659   :  { %v2787_v55 = vadd.f32 %v2786_v22, %v2779_v54 }
 0x65b   :  { %2788 = vadd.xlane.f32.xlu0 %v2787_v55 }
 0x6e0   :  { %v2784_v45 = vpop.xlane.xlu0 %2783 }
 0x6e1   :  { %v2790_v34 = vmul.f32 0.001953125, %v2784_v45 }
 0x6e3   :  { %v2792_v8 = vadd.f32 1e-05, %v2790_v34 }
 0x6e4   :  { %v2789_v26 = vpop.xlane.xlu0 %2788 }
 0x6e5   :  { %3170 = vrsqrt.f32 %v2792_v8  ;;  %v2791_v56 = vmul.f32 0.001953125, %v2789_v26 }
 0x6e7   :  { %v2793_v37 = vadd.f32 1e-05, %v2791_v56 }
 0x6e9   :  { %3172 = vrsqrt.f32 %v2793_v37 }
 0x6f2   :  { %v3171_v14 = vpop.eup %3170 }
 0x6f3   :  { %v2796_v36 = vmul.f32 %v3171_v14, %v2748_v1 }
 0x6f5   :  { %2800 = vperm.xlu1 %3094, %v2796_v36  }
 0x6f6   :  { %v3173_v20 = vpop.eup %3172 }
 0x6f7   :  { %v2797_v59 = vmul.f32 %v3173_v20, %v2749_v57 }
 0x6f9   :  { %2818 = vperm.xlu1 %3094, %v2750_v2   ;;  %2805 = vperm.xlu0 %3095, %v2797_v59  }
 0x6fd   :  { %2823 = vperm.xlu1 %3094, %v2751_v30  }
 0x770   :  { %v2801_v11 = vpop.permute.xlu1 %2800 }
 0x771   :  { %v2808_v50 = vmul.f32 %v2801_v11, %v2764_v25  ;;  %v2809_v43 = vmul.f32 %v2801_v11, %v2765_v47  ;;  %v2810_v28 = vmul.f32 %v2801_v11, %v2766_v24  ;;  %v2811_v3 = vmul.f32 %v2801_v11, %v2767_v6  ;;  %v2841_v25 = vld [vmem:[%s4205_s0 + $0x38] sm:$0xff]  ;;  %s3242_s0 = scalar_lea.vmem %s2872_s28, 1024 }
 0x772   :  { %p3243_p1 = scmp.ne.s32.totalorder %s2872_s28, %s3242_s0  ;;  %p3248_p3 = scmp.lt.s32.totalorder %s3242_s0, %s3242_s0 }
 0x774   :  { %v2806_v7 = vpop.permute.xlu0 %2805  ;;  %v2819_v12 = vpop.permute.xlu1 %2818  ;;  %p3249_p4 = por %p3248_p3, %p3247_p2 }
 0x775   :  { %v2826_v31 = vadd.f32 %v2819_v12, %v2808_v50  ;;  %v2827_v46 = vadd.f32 %v2819_v12, %v2809_v43  ;;  %v2828_v4 = vadd.f32 %v2819_v12, %v2810_v28  ;;  %v2829_v44 = vadd.f32 %v2819_v12, %v2811_v3 }
 0x776   :  { %v2812_v19 = vmul.f32 %v2806_v7, %v2768_v39  ;;  %v2813_v33 = vmul.f32 %v2806_v7, %v2769_v41  ;;  %v2814_v38 = vmul.f32 %v2806_v7, %v2770_v49  ;;  %v2815_v63 = vmul.f32 %v2806_v7, %v2771_v5  ;;  %p3250_p5 = pnand %p3249_p4, %p3243_p1 }
 0x777   :  { %v2842_v23 = vadd.f32 %v2834_v21, %v2826_v31  ;;  %v2843_v10 = vadd.f32 %v2835_v17, %v2827_v46  ;;  %v2844_v32 = vadd.f32 %v2836_v48, %v2828_v4  ;;  %v2845_v13 = vadd.f32 %v2837_v27, %v2829_v44 }
 0x778   :  { %v2824_v47 = vpop.permute.xlu1 %2823 }
 0x779   :  { %v2830_v24 = vadd.f32 %v2824_v47, %v2812_v19  ;;  %v2831_v0 = vadd.f32 %v2824_v47, %v2813_v33  ;;  %v2832_v6 = vadd.f32 %v2824_v47, %v2814_v38  ;;  %v2833_v40 = vadd.f32 %v2824_v47, %v2815_v63 }
 0x77a   :  { %v2850_v29 = vmax.f32 %v2842_v23, 0.0  ;;  %v2851_v58 = vmax.f32 %v2843_v10, 0.0  ;;  %v2852_v61 = vmax.f32 %v2844_v32, 0.0  ;;  %v2853_v39 = vmax.f32 %v2845_v13, 0.0 }
 0x77b   :  { %v2846_v41 = vadd.f32 %v2838_v52, %v2830_v24  ;;  %v2847_v49 = vadd.f32 %v2839_v53, %v2831_v0  ;;  %v2848_v15 = vadd.f32 %v2840_v51, %v2832_v6  ;;  %v2849_v16 = vadd.f32 %v2841_v25, %v2833_v40 }
 0x77c   :  { %2858 = vst [vmem:[#allocation10] sm:$0xff] %v2850_v29  ;;  %2859 = vst [vmem:[#allocation10 + $0x8] sm:$0xff] %v2851_v58 }
 0x77d   :  { %2860 = vst [vmem:[#allocation10 + $0x10] sm:$0xff] %v2852_v61  ;;  %2861 = vst [vmem:[#allocation10 + $0x18] sm:$0xff] %v2853_v39  ;;  %v2854_v35 = vmax.f32 %v2846_v41, 0.0  ;;  %v2855_v5 = vmax.f32 %v2847_v49, 0.0  ;;  %v2856_v42 = vmax.f32 %v2848_v15, 0.0  ;;  %v2857_v60 = vmax.f32 %v2849_v16, 0.0 }
 0x77f   :  { %2862 = vst [vmem:[#allocation10 + $0x20] sm:$0xff] %v2854_v35  ;;  %2863 = vst [vmem:[#allocation10 + $0x28] sm:$0xff] %v2855_v5 }
 0x780   :  { %2864 = vst [vmem:[#allocation10 + $0x30] sm:$0xff] %v2856_v42  ;;  %2865 = vst [vmem:[#allocation10 + $0x38] sm:$0xff] %v2857_v60 }
 0x781   :  { %3253 = shalt.err (!%p3250_p5)
}
 0x782   :  { %s3284_s30 = smov 512   ;;  %s3285_s4 = smov 32  }
 0x783   :  { %2877 = dma.vmem_to_hbm [thread:$0]  %s2872_s28, 1024, %s4213_s8, [#allocation6], %s3284_s30, %s3284_s30, %s3285_s4  }
 0x784   :  { %3266 = dma.done.wait [#allocation6], 1024  }
 0x785   :  { %3267 = vsyncadd [#allocation6], 4294966272 }
 0x786   :  { %2881 = vsyncpa [#allocation5], 1 }
 0x787   :  { %2882 = vsyncpa [#allocation8], 1 }
 0x788   :  { %2883 = vsyncpa [#allocation6], 1 }

</bundles_post_ra>
